<compile_context>
chip_gen: v5e
topology: v5e:2x2
jax: 0.10.0
libtpu: 0.0.40
codegen_flags: <defaults>
</compile_context>

<pallas_src>
import functools

import jax
import jax.numpy as jnp
import numpy as np
from jax import lax
from jax.experimental import pallas as pl
from jax.experimental.pallas import tpu as pltpu


_NEG_INF = -10000.0      # matches the torch module's "impossible" init value
_PAD_NEG = -100000.0     # padding value for padded tag rows/cols of transitions


def _round_up(x, m):
    return (x + m - 1) // m * m


# --------------------------------------------------------------------------
# Pallas kernel: one (batch-block, time-block) tile of the Viterbi recursion
# --------------------------------------------------------------------------
def _viterbi_step_kernel(mask_ref, feats_ref, trans_ref,
                         bt_ref, best_ref, score_ref, alpha_ref, *, n_tags):
    """Batch on lanes, (padded) tags on sublanes.

    mask_ref : (TT, 1, TB)   int32  valid-token flags for this time block
    feats_ref: (TT, CP, TB)  f32    emissions, batch-last
    trans_ref: (CP, CP, TB)  f32    transitions[prev, next] broadcast on lanes
    bt_ref   : (TT, CP, TB)  int8   backpointers (best prev tag per next tag)
    best_ref : (1, TB)       int32  best final tag   (written by last t-block)
    score_ref: (1, TB)       f32    terminal logsumexp (written by last t-block)
    alpha_ref: (CP, TB)      f32    running Viterbi scores (scratch; persists
                                    across the sequential time-block axis)
    """
    t_blk = pl.program_id(1)
    n_t_blk = pl.num_programs(1)
    cp, tb = alpha_ref.shape
    tt = feats_ref.shape[0]
    c = n_tags
    start_tag = c - 2
    stop_tag = c - 1

    @pl.when(t_blk == 0)
    def _init():
        row = lax.broadcasted_iota(jnp.int32, (cp, tb), 0)
        alpha_ref[...] = jnp.where(row == start_tag, 0.0, _NEG_INF).astype(jnp.float32)

    # Per-prev-tag transition rows (next tag on sublanes, batch on lanes).
    # Hoisted out of the time loop — loop-invariant.
    trans_rows = [trans_ref[p] for p in range(c)]            # each (CP, TB)

    # Fully unrolled in-kernel time loop: TT Viterbi steps per grid point.
    for tau in range(tt):
        alpha = alpha_ref[...]                               # (CP, TB), prev tags
        # Single-pass running (max, argmax) over prev tags — no smat tensor.
        best_val = alpha[0:1, :] + trans_rows[0]             # (CP, TB)
        best_idx = jnp.zeros((cp, tb), dtype=jnp.int32)
        for p in range(1, c):
            cand = alpha[p:p + 1, :] + trans_rows[p]
            better = cand > best_val                         # strict '>' keeps first-index ties
            best_val = jnp.where(better, cand, best_val)
            best_idx = jnp.where(better, p, best_idx)
        bt_ref[tau] = best_idx.astype(bt_ref.dtype)
        alpha_new = best_val + feats_ref[tau]                # emissions indexed by next tag
        valid = mask_ref[tau] > 0                            # (1, TB)
        alpha_ref[...] = jnp.where(valid, alpha_new, alpha)

    @pl.when(t_blk == n_t_blk - 1)
    def _finalize():
        a = alpha_ref[...]                                   # (CP, TB), prev tags
        tr_all = trans_ref[...]                              # (CP, CP, TB)
        final = a + tr_all[:, stop_tag, :]                   # + trans[prev, STOP]
        fmax = jnp.max(final, axis=0, keepdims=True)         # (1, TB)
        pidx = lax.broadcasted_iota(jnp.int32, (cp, tb), 0)
        best = jnp.min(jnp.where(final >= fmax, pidx, cp), axis=0, keepdims=True)
        best_ref[...] = best.astype(jnp.int32)
        score_ref[...] = fmax + jnp.log(
            jnp.sum(jnp.exp(final - fmax), axis=0, keepdims=True))


@functools.partial(jax.jit, static_argnames=("batch_block", "time_block"))
def _viterbi_pallas(feats, mask, transitions, *, batch_block=256, time_block=16):
    """Runs the Viterbi recursion on TPU.

    feats: (B, T, C) float, mask: (B, T), transitions: (C, C).
    Returns (backtrace (T, CP, B) int8, best (B,) int32, score (B,) f32).
    """
    b_sz, t_len, c = feats.shape
    cp = _round_up(c, 8)            # tag axis padded to a full sublane group

    # Batch tile on the lane axis. Small batches use the full batch (legal as a
    # full-dim block); large batches use 128/256-lane tiles so lanes stay dense
    # and v7x gets >= 2 "parallel" blocks for its two TensorCores.
    if b_sz <= 128:
        tb = b_sz
    elif b_sz < 512:
        tb = 128
    else:
        tb = min(256, batch_block)
    b_pad = _round_up(b_sz, tb)

    # Time block: TT Viterbi steps per grid point; tail padded with mask=0.
    tt = t_len if t_len <= time_block else time_block
    t_pad = _round_up(t_len, tt)

    f = jnp.transpose(feats.astype(jnp.float32), (1, 2, 0))          # (T, C, B)
    f = jnp.pad(f, ((0, t_pad - t_len), (0, cp - c), (0, b_pad - b_sz)))
    m = jnp.transpose(mask.astype(jnp.int32), (1, 0))[:, None, :]    # (T, 1, B)
    m = jnp.pad(m, ((0, t_pad - t_len), (0, 0), (0, b_pad - b_sz)))
    tr = transitions.astype(jnp.float32)
    tr = jnp.pad(tr, ((0, cp - c), (0, cp - c)), constant_values=_PAD_NEG)
    tr_bc = jnp.broadcast_to(tr[:, :, None], (cp, cp, tb))           # lane-dense

    n_b = b_pad // tb
    n_t = t_pad // tt

    backtrace, best, score = pl.pallas_call(
        functools.partial(_viterbi_step_kernel, n_tags=c),
        grid=(n_b, n_t),
        in_specs=[
            pl.BlockSpec((tt, 1, tb), lambda b, t: (t, 0, b)),       # mask
            pl.BlockSpec((tt, cp, tb), lambda b, t: (t, 0, b)),      # emissions
            pl.BlockSpec((cp, cp, tb), lambda b, t: (0, 0, 0)),      # transitions
        ],
        out_specs=[
            pl.BlockSpec((tt, cp, tb), lambda b, t: (t, 0, b)),      # backpointers
            pl.BlockSpec((1, tb), lambda b, t: (0, b)),              # best tag
            pl.BlockSpec((1, tb), lambda b, t: (0, b)),              # terminal lse
        ],
        out_shape=[
            jax.ShapeDtypeStruct((t_pad, cp, b_pad), jnp.int8),
            jax.ShapeDtypeStruct((1, b_pad), jnp.int32),
            jax.ShapeDtypeStruct((1, b_pad), jnp.float32),
        ],
        scratch_shapes=[pltpu.VMEM((cp, tb), jnp.float32)],
        compiler_params=pltpu.CompilerParams(
            dimension_semantics=("parallel", "arbitrary"),
            vmem_limit_bytes=32 * 1024 * 1024),
    )(m, f, tr_bc)

    return backtrace[:t_len, :, :b_sz], best[0, :b_sz], score[0, :b_sz]


def _backtrack(backtrace, best, seq_len):
    """Vectorized reverse walk of the backpointers.

    backtrace: (T, CP, B) int8, best: (B,) int32, seq_len: (B,) int32.
    Returns a dense (B, T) int32 array; row b is valid in [0, seq_len[b]).
    """
    t_len = backtrace.shape[0]

    def step(cur, t):
        tp1 = jnp.minimum(t + 1, t_len - 1)
        bt_t = backtrace[tp1]                                        # (CP, B)
        from_bt = jnp.take_along_axis(
            bt_t, cur[None, :], axis=0)[0].astype(jnp.int32)         # (B,)
        val = jnp.where(t == seq_len - 1, best,
                        jnp.where(t < seq_len - 1, from_bt, 0))
        new_cur = jnp.where(t <= seq_len - 1, val, cur)
        return new_cur, val

    _, path_rev = lax.scan(step, best, jnp.arange(t_len - 1, -1, -1))
    return path_rev[::-1].T                                          # (B, T)


# --------------------------------------------------------------------------
# Module mirrors
# --------------------------------------------------------------------------
class BackBone:
    """JAX mirror of the abstract PyTorch BackBone base class."""

    def __init__(self, n_class, binary_mode=False):
        if binary_mode:
            assert n_class == 2
            n_class = 1
        self.n_class = n_class
        self.dummy_param = jnp.zeros((0,), dtype=jnp.float32)

    @property
    def device(self):
        return list(self.dummy_param.devices())[0]

    def get_device(self):
        return self.device


class CRF(BackBone):
    START_TAG = -2
    STOP_TAG = -1

    def __init__(self, worker_number, n_class, pi, ablation, scaling,
                 batch_mode=True, key=None):
        super().__init__(n_class=n_class)
        self.n_class = n_class + 2
        self.worker_number = worker_number
        self.batch_mode = batch_mode
        self.pi = jnp.asarray(pi, dtype=jnp.float32)
        self.ablation = ablation

        if key is None:
            key = jax.random.PRNGKey(0)
        k_t, k_w = jax.random.split(key)
        c = self.n_class

        trans = jax.random.normal(k_t, (c, c), dtype=jnp.float32)
        trans = trans.at[:, self.START_TAG].set(-100000.0)
        trans = trans.at[self.STOP_TAG, :].set(-100000.0)
        self.transitions = trans

        wtrans = jax.random.normal(k_w, (worker_number, c, c), dtype=jnp.float32)
        wtrans = wtrans.at[:, :n_class, :n_class].set(
            scaling * self.pi[:, :n_class, :n_class])
        wtrans = wtrans.at[:, :, self.START_TAG].set(-10000.0)
        wtrans = wtrans.at[:, self.STOP_TAG, :].set(-10000.0)
        wtrans = wtrans.at[:, self.START_TAG, :].set(-10000.0)
        wtrans = wtrans.at[:, :, self.STOP_TAG].set(-10000.0)
        self.worker_transitions = wtrans

        self.start_id = jnp.array([self.START_TAG], dtype=jnp.int32)
        self.stop_id = jnp.array([self.STOP_TAG], dtype=jnp.int32)

    def viterbi_decode_batch(self, feats, mask, transitions=None):
        if transitions is None:
            transitions = self.transitions
        b_sz = feats.shape[0]

        backtrace, best, score = _viterbi_pallas(feats, mask, transitions)
        seq_len = jnp.sum(mask.astype(jnp.int32), axis=1)
        dense_paths = _backtrack(backtrace, best, seq_len)

        # Ragged list-of-lists output, matching the torch reference.
        dense_np = jax.device_get(dense_paths)
        lens_np = jax.device_get(seq_len)
        best_paths = [list(map(int, dense_np[b, : int(lens_np[b])]))
                      for b in range(b_sz)]
        scores = jax.device_get(score).reshape(-1).tolist()
        if len(scores) == 1:
            scores = scores[0]
        return scores, best_paths

    def forward(self, feats, mask):
        tags = []
        scores = []
        score, tag_seq_2 = self.viterbi_decode_batch(feats, mask)
        tags.append(tag_seq_2)
        return scores, tag_seq_2

    __call__ = forward


# --------------------------------------------------------------------------
# Pure numpy reference (mirrors torch viterbi_decode_batch) for validation
# --------------------------------------------------------------------------
def _viterbi_reference(feats, mask, transitions):
    feats = np.asarray(feats, dtype=np.float32)
    maskb = np.asarray(mask).astype(bool)
    trans = np.asarray(transitions, dtype=np.float32)
    b_sz, t_len, c = feats.shape
    alpha = np.full((b_sz, c), -10000.0, dtype=np.float32)
    alpha[:, c - 2] = 0.0
    backtrace = np.zeros((b_sz, t_len, c), dtype=np.int64)
    for t in range(t_len):
        smat = alpha[:, :, None] + feats[:, t, :][:, None, :] + trans[None, :, :]
        backtrace[:, t, :] = smat.argmax(1)
        alpha_new = smat.max(1)
        alpha = np.where(maskb[:, t][:, None], alpha_new, alpha)
    final = alpha + trans[:, c - 1][None, :]
    best = final.argmax(1)
    fmax = final.max(1)
    score = fmax + np.log(np.exp(final - fmax[:, None]).sum(1))
    seq_len = maskb.sum(1)
    paths = []
    for b in range(b_sz):
        l = int(seq_len[b])
        cur = int(best[b])
        path = [cur]
        for t in range(l - 1, 0, -1):
            cur = int(backtrace[b, t, cur])
            path.append(cur)
        paths.append(path[::-1])
    return score, paths


# --------------------------------------------------------------------------
# Demo / self-check
# --------------------------------------------------------------------------
if __name__ == "__main__":
    key = jax.random.PRNGKey(0)
    k_feats, k_pi, k_model, k_feats2 = jax.random.split(key, 4)

    batch, seq, n_class, workers = 2, 8, 5, 3
    C = n_class + 2  # tags + START + STOP

    feats = jax.random.normal(k_feats, (batch, seq, C), dtype=jnp.float32)
    lengths = jnp.array([seq, 5], dtype=jnp.int32)
    mask = (jnp.arange(seq)[None, :] < lengths[:, None]).astype(jnp.int32)
    pi = jax.random.normal(k_pi, (workers, n_class, n_class), dtype=jnp.float32)

    model = CRF(worker_number=workers, n_class=n_class, pi=pi,
                ablation=None, scaling=1.0, batch_mode=True, key=k_model)
    assert model.n_class == C
    assert model.dummy_param.shape == (0,)
    _ = model.get_device()

    # Run the Pallas kernel once and block on its outputs.
    bt, best, score = _viterbi_pallas(feats, mask, model.transitions)
    jax.block_until_ready((bt, best, score))

    # End-to-end forward (Viterbi decode) and validation against reference.
    fwd_scores, best_paths = model.forward(feats, mask)
    assert fwd_scores == []  # the reference forward() returns an empty scores list

    krn_scores, krn_paths = model.viterbi_decode_batch(feats, mask)
    ref_scores, ref_paths = _viterbi_reference(feats, mask, model.transitions)
    assert krn_paths == ref_paths, (krn_paths, ref_paths)
    assert best_paths == ref_paths
    np.testing.assert_allclose(np.asarray(krn_scores), np.asarray(ref_scores),
                               rtol=1e-4, atol=1e-3)
    assert all(len(p) == int(l) for p, l in zip(best_paths, lengths))

    # Second check: exercises time-axis blocking (T > time_block) and padding.
    batch2, seq2 = 4, 37
    feats2 = jax.random.normal(k_feats2, (batch2, seq2, C), dtype=jnp.float32)
    lengths2 = jnp.array([seq2, 20, 1, 33], dtype=jnp.int32)
    mask2 = (jnp.arange(seq2)[None, :] < lengths2[:, None]).astype(jnp.int32)
    krn_scores2, krn_paths2 = model.viterbi_decode_batch(feats2, mask2)
    ref_scores2, ref_paths2 = _viterbi_reference(feats2, mask2, model.transitions)
    assert krn_paths2 == ref_paths2, (krn_paths2, ref_paths2)
    np.testing.assert_allclose(np.asarray(krn_scores2), np.asarray(ref_scores2),
                               rtol=1e-4, atol=1e-3)

    print("KERNEL_OK")
</pallas_src>

<mosaic_0001>
module attributes {stable_mosaic.version = 11 : i64} {
  func.func @_viterbi_step_kernel(%arg0: i32, %arg1: i32, %arg2: memref<8x1x2xi32, #tpu.memory_space<vmem>>, %arg3: memref<8x8x2xf32, #tpu.memory_space<vmem>>, %arg4: memref<8x8x2xf32, #tpu.memory_space<vmem>>, %arg5: memref<8x8x2xi8, #tpu.memory_space<vmem>>, %arg6: memref<1x2xi32, #tpu.memory_space<vmem>>, %arg7: memref<1x2xf32, #tpu.memory_space<vmem>>, %arg8: memref<8x2xf32, #tpu.memory_space<vmem>>) attributes {dimension_semantics = [#tpu.dimension_semantics<parallel>, #tpu.dimension_semantics<arbitrary>], iteration_bounds = array<i64: 1, 1>, scalar_prefetch = 0 : i64, scratch_operands = 1 : i64, tpu.core_type = #tpu.core_type<tc>, window_params = [{transform_indices = @transform_0, window_bounds = array<i64: 8, 1, 2>}, {transform_indices = @transform_1, window_bounds = array<i64: 8, 8, 2>}, {pipeline_mode = #tpu.pipeline_mode<synchronous>, transform_indices = @transform_2, window_bounds = array<i64: 8, 8, 2>}, {transform_indices = @transform_3, window_bounds = array<i64: 8, 8, 2>}, {transform_indices = @transform_4, window_bounds = array<i64: 1, 2>}, {transform_indices = @transform_5, window_bounds = array<i64: 1, 2>}]} {
    %c0_i32 = arith.constant 0 : i32
    %0 = arith.cmpi eq, %arg1, %c0_i32 : i32
    %1 = arith.extui %0 : i1 to i32
    %c0_i32_0 = arith.constant 0 : i32
    %2 = arith.cmpi ne, %1, %c0_i32_0 : i32
    scf.if %2 {
      %516 = tpu.iota {dimensions = array<i32: 0>} : vector<8x2xi32>
      %c5_i32_178 = arith.constant 5 : i32
      %517 = vector.broadcast %c5_i32_178 : i32 to vector<8x2xi32>
      %518 = arith.cmpi eq, %516, %517 : vector<8x2xi32>
      %cst = arith.constant 0.000000e+00 : f32
      %cst_179 = arith.constant -1.000000e+04 : f32
      %519 = vector.broadcast %cst : f32 to vector<8x2xf32>
      %520 = vector.broadcast %cst_179 : f32 to vector<8x2xf32>
      %521 = arith.select %518, %519, %520 : vector<8x2xi1>, vector<8x2xf32>
      %c0_180 = arith.constant 0 : index
      %c0_181 = arith.constant 0 : index
      %522 = vector.load %arg8[%c0_180, %c0_181] : memref<8x2xf32, #tpu.memory_space<vmem>>, vector<8x2xf32>
      tpu.vector_store %arg8[%c0_180, %c0_181], %521 {strides = array<i32>} : memref<8x2xf32, #tpu.memory_space<vmem>>, vector<8x2xf32>,
    } else {
    }
    %c0 = arith.constant 0 : index
    %c0_1 = arith.constant 0 : index
    %c0_2 = arith.constant 0 : index
    %3 = vector.load %arg4[%c0, %c0_1, %c0_2] : memref<8x8x2xf32, #tpu.memory_space<vmem>>, vector<1x8x2xf32>
    %4 = vector.shape_cast %3 : vector<1x8x2xf32> to vector<8x2xf32>
    %c1 = arith.constant 1 : index
    %c0_3 = arith.constant 0 : index
    %c0_4 = arith.constant 0 : index
    %5 = vector.load %arg4[%c1, %c0_3, %c0_4] : memref<8x8x2xf32, #tpu.memory_space<vmem>>, vector<1x8x2xf32>
    %6 = vector.shape_cast %5 : vector<1x8x2xf32> to vector<8x2xf32>
    %c2 = arith.constant 2 : index
    %c0_5 = arith.constant 0 : index
    %c0_6 = arith.constant 0 : index
    %7 = vector.load %arg4[%c2, %c0_5, %c0_6] : memref<8x8x2xf32, #tpu.memory_space<vmem>>, vector<1x8x2xf32>
    %8 = vector.shape_cast %7 : vector<1x8x2xf32> to vector<8x2xf32>
    %c3 = arith.constant 3 : index
    %c0_7 = arith.constant 0 : index
    %c0_8 = arith.constant 0 : index
    %9 = vector.load %arg4[%c3, %c0_7, %c0_8] : memref<8x8x2xf32, #tpu.memory_space<vmem>>, vector<1x8x2xf32>
    %10 = vector.shape_cast %9 : vector<1x8x2xf32> to vector<8x2xf32>
    %c4 = arith.constant 4 : index
    %c0_9 = arith.constant 0 : index
    %c0_10 = arith.constant 0 : index
    %11 = vector.load %arg4[%c4, %c0_9, %c0_10] : memref<8x8x2xf32, #tpu.memory_space<vmem>>, vector<1x8x2xf32>
    %12 = vector.shape_cast %11 : vector<1x8x2xf32> to vector<8x2xf32>
    %c5 = arith.constant 5 : index
    %c0_11 = arith.constant 0 : index
    %c0_12 = arith.constant 0 : index
    %13 = vector.load %arg4[%c5, %c0_11, %c0_12] : memref<8x8x2xf32, #tpu.memory_space<vmem>>, vector<1x8x2xf32>
    %14 = vector.shape_cast %13 : vector<1x8x2xf32> to vector<8x2xf32>
    %c6 = arith.constant 6 : index
    %c0_13 = arith.constant 0 : index
    %c0_14 = arith.constant 0 : index
    %15 = vector.load %arg4[%c6, %c0_13, %c0_14] : memref<8x8x2xf32, #tpu.memory_space<vmem>>, vector<1x8x2xf32>
    %16 = vector.shape_cast %15 : vector<1x8x2xf32> to vector<8x2xf32>
    %c0_15 = arith.constant 0 : index
    %c0_16 = arith.constant 0 : index
    %17 = vector.load %arg8[%c0_15, %c0_16] : memref<8x2xf32, #tpu.memory_space<vmem>>, vector<8x2xf32>
    %18 = vector.extract_strided_slice %17 {offsets = [0, 0], sizes = [1, 2], strides = [1, 1]} : vector<8x2xf32> to vector<1x2xf32>
    %19 = vector.broadcast %18 : vector<1x2xf32> to vector<8x2xf32>
    %20 = arith.addf %19, %4 : vector<8x2xf32>
    %c0_i32_17 = arith.constant 0 : i32
    %21 = vector.broadcast %c0_i32_17 : i32 to vector<8x2xi32>
    %22 = vector.extract_strided_slice %17 {offsets = [1, 0], sizes = [1, 2], strides = [1, 1]} : vector<8x2xf32> to vector<1x2xf32>
    %23 = vector.broadcast %22 : vector<1x2xf32> to vector<8x2xf32>
    %24 = arith.addf %23, %6 : vector<8x2xf32>
    %25 = arith.cmpf ogt, %24, %20 : vector<8x2xf32>
    %26 = arith.select %25, %24, %20 : vector<8x2xi1>, vector<8x2xf32>
    %c1_i32 = arith.constant 1 : i32
    %27 = vector.broadcast %c1_i32 : i32 to vector<8x2xi32>
    %28 = arith.select %25, %27, %21 : vector<8x2xi1>, vector<8x2xi32>
    %29 = vector.extract_strided_slice %17 {offsets = [2, 0], sizes = [1, 2], strides = [1, 1]} : vector<8x2xf32> to vector<1x2xf32>
    %30 = vector.broadcast %29 : vector<1x2xf32> to vector<8x2xf32>
    %31 = arith.addf %30, %8 : vector<8x2xf32>
    %32 = arith.cmpf ogt, %31, %26 : vector<8x2xf32>
    %33 = arith.select %32, %31, %26 : vector<8x2xi1>, vector<8x2xf32>
    %c2_i32 = arith.constant 2 : i32
    %34 = vector.broadcast %c2_i32 : i32 to vector<8x2xi32>
    %35 = arith.select %32, %34, %28 : vector<8x2xi1>, vector<8x2xi32>
    %36 = vector.extract_strided_slice %17 {offsets = [3, 0], sizes = [1, 2], strides = [1, 1]} : vector<8x2xf32> to vector<1x2xf32>
    %37 = vector.broadcast %36 : vector<1x2xf32> to vector<8x2xf32>
    %38 = arith.addf %37, %10 : vector<8x2xf32>
    %39 = arith.cmpf ogt, %38, %33 : vector<8x2xf32>
    %40 = arith.select %39, %38, %33 : vector<8x2xi1>, vector<8x2xf32>
    %c3_i32 = arith.constant 3 : i32
    %41 = vector.broadcast %c3_i32 : i32 to vector<8x2xi32>
    %42 = arith.select %39, %41, %35 : vector<8x2xi1>, vector<8x2xi32>
    %43 = vector.extract_strided_slice %17 {offsets = [4, 0], sizes = [1, 2], strides = [1, 1]} : vector<8x2xf32> to vector<1x2xf32>
    %44 = vector.broadcast %43 : vector<1x2xf32> to vector<8x2xf32>
    %45 = arith.addf %44, %12 : vector<8x2xf32>
    %46 = arith.cmpf ogt, %45, %40 : vector<8x2xf32>
    %47 = arith.select %46, %45, %40 : vector<8x2xi1>, vector<8x2xf32>
    %c4_i32 = arith.constant 4 : i32
    %48 = vector.broadcast %c4_i32 : i32 to vector<8x2xi32>
    %49 = arith.select %46, %48, %42 : vector<8x2xi1>, vector<8x2xi32>
    %50 = vector.extract_strided_slice %17 {offsets = [5, 0], sizes = [1, 2], strides = [1, 1]} : vector<8x2xf32> to vector<1x2xf32>
    %51 = vector.broadcast %50 : vector<1x2xf32> to vector<8x2xf32>
    %52 = arith.addf %51, %14 : vector<8x2xf32>
    %53 = arith.cmpf ogt, %52, %47 : vector<8x2xf32>
    %54 = arith.select %53, %52, %47 : vector<8x2xi1>, vector<8x2xf32>
    %c5_i32 = arith.constant 5 : i32
    %55 = vector.broadcast %c5_i32 : i32 to vector<8x2xi32>
    %56 = arith.select %53, %55, %49 : vector<8x2xi1>, vector<8x2xi32>
    %57 = vector.extract_strided_slice %17 {offsets = [6, 0], sizes = [1, 2], strides = [1, 1]} : vector<8x2xf32> to vector<1x2xf32>
    %58 = vector.broadcast %57 : vector<1x2xf32> to vector<8x2xf32>
    %59 = arith.addf %58, %16 : vector<8x2xf32>
    %60 = arith.cmpf ogt, %59, %54 : vector<8x2xf32>
    %61 = arith.select %60, %59, %54 : vector<8x2xi1>, vector<8x2xf32>
    %c6_i32 = arith.constant 6 : i32
    %62 = vector.broadcast %c6_i32 : i32 to vector<8x2xi32>
    %63 = arith.select %60, %62, %56 : vector<8x2xi1>, vector<8x2xi32>
    %64 = arith.trunci %63 : vector<8x2xi32> to vector<8x2xi8>
    %c0_18 = arith.constant 0 : index
    %c0_19 = arith.constant 0 : index
    %c0_20 = arith.constant 0 : index
    %65 = vector.load %arg5[%c0_18, %c0_19, %c0_20] : memref<8x8x2xi8, #tpu.memory_space<vmem>>, vector<1x8x2xi8>
    %66 = vector.shape_cast %65 : vector<1x8x2xi8> to vector<8x2xi8>
    %67 = vector.shape_cast %64 : vector<8x2xi8> to vector<1x8x2xi8>
    tpu.vector_store %arg5[%c0_18, %c0_19, %c0_20], %67 {strides = array<i32>} : memref<8x8x2xi8, #tpu.memory_space<vmem>>, vector<1x8x2xi8>,
    %c0_21 = arith.constant 0 : index
    %c0_22 = arith.constant 0 : index
    %c0_23 = arith.constant 0 : index
    %68 = vector.load %arg3[%c0_21, %c0_22, %c0_23] : memref<8x8x2xf32, #tpu.memory_space<vmem>>, vector<1x8x2xf32>
    %69 = vector.shape_cast %68 : vector<1x8x2xf32> to vector<8x2xf32>
    %70 = arith.addf %61, %69 : vector<8x2xf32>
    %c0_24 = arith.constant 0 : index
    %c0_25 = arith.constant 0 : index
    %c0_26 = arith.constant 0 : index
    %71 = vector.load %arg2[%c0_24, %c0_25, %c0_26] : memref<8x1x2xi32, #tpu.memory_space<vmem>>, vector<1x1x2xi32>
    %72 = vector.shape_cast %71 : vector<1x1x2xi32> to vector<1x2xi32>
    %c0_i32_27 = arith.constant 0 : i32
    %73 = vector.broadcast %c0_i32_27 : i32 to vector<1x2xi32>
    %74 = arith.cmpi sgt, %72, %73 : vector<1x2xi32>
    %75 = vector.shape_cast %74 : vector<1x2xi1> to vector<1x2xi1>
    %76 = vector.broadcast %75 : vector<1x2xi1> to vector<8x2xi1>
    %77 = arith.select %76, %70, %17 : vector<8x2xi1>, vector<8x2xf32>
    %c0_28 = arith.constant 0 : index
    %c0_29 = arith.constant 0 : index
    %78 = vector.load %arg8[%c0_28, %c0_29] : memref<8x2xf32, #tpu.memory_space<vmem>>, vector<8x2xf32>
    tpu.vector_store %arg8[%c0_28, %c0_29], %77 {strides = array<i32>} : memref<8x2xf32, #tpu.memory_space<vmem>>, vector<8x2xf32>,
    %c0_30 = arith.constant 0 : index
    %c0_31 = arith.constant 0 : index
    %79 = vector.load %arg8[%c0_30, %c0_31] : memref<8x2xf32, #tpu.memory_space<vmem>>, vector<8x2xf32>
    %80 = vector.extract_strided_slice %79 {offsets = [0, 0], sizes = [1, 2], strides = [1, 1]} : vector<8x2xf32> to vector<1x2xf32>
    %81 = vector.broadcast %80 : vector<1x2xf32> to vector<8x2xf32>
    %82 = arith.addf %81, %4 : vector<8x2xf32>
    %c0_i32_32 = arith.constant 0 : i32
    %83 = vector.broadcast %c0_i32_32 : i32 to vector<8x2xi32>
    %84 = vector.extract_strided_slice %79 {offsets = [1, 0], sizes = [1, 2], strides = [1, 1]} : vector<8x2xf32> to vector<1x2xf32>
    %85 = vector.broadcast %84 : vector<1x2xf32> to vector<8x2xf32>
    %86 = arith.addf %85, %6 : vector<8x2xf32>
    %87 = arith.cmpf ogt, %86, %82 : vector<8x2xf32>
    %88 = arith.select %87, %86, %82 : vector<8x2xi1>, vector<8x2xf32>
    %c1_i32_33 = arith.constant 1 : i32
    %89 = vector.broadcast %c1_i32_33 : i32 to vector<8x2xi32>
    %90 = arith.select %87, %89, %83 : vector<8x2xi1>, vector<8x2xi32>
    %91 = vector.extract_strided_slice %79 {offsets = [2, 0], sizes = [1, 2], strides = [1, 1]} : vector<8x2xf32> to vector<1x2xf32>
    %92 = vector.broadcast %91 : vector<1x2xf32> to vector<8x2xf32>
    %93 = arith.addf %92, %8 : vector<8x2xf32>
    %94 = arith.cmpf ogt, %93, %88 : vector<8x2xf32>
    %95 = arith.select %94, %93, %88 : vector<8x2xi1>, vector<8x2xf32>
    %c2_i32_34 = arith.constant 2 : i32
    %96 = vector.broadcast %c2_i32_34 : i32 to vector<8x2xi32>
    %97 = arith.select %94, %96, %90 : vector<8x2xi1>, vector<8x2xi32>
    %98 = vector.extract_strided_slice %79 {offsets = [3, 0], sizes = [1, 2], strides = [1, 1]} : vector<8x2xf32> to vector<1x2xf32>
    %99 = vector.broadcast %98 : vector<1x2xf32> to vector<8x2xf32>
    %100 = arith.addf %99, %10 : vector<8x2xf32>
    %101 = arith.cmpf ogt, %100, %95 : vector<8x2xf32>
    %102 = arith.select %101, %100, %95 : vector<8x2xi1>, vector<8x2xf32>
    %c3_i32_35 = arith.constant 3 : i32
    %103 = vector.broadcast %c3_i32_35 : i32 to vector<8x2xi32>
    %104 = arith.select %101, %103, %97 : vector<8x2xi1>, vector<8x2xi32>
    %105 = vector.extract_strided_slice %79 {offsets = [4, 0], sizes = [1, 2], strides = [1, 1]} : vector<8x2xf32> to vector<1x2xf32>
    %106 = vector.broadcast %105 : vector<1x2xf32> to vector<8x2xf32>
    %107 = arith.addf %106, %12 : vector<8x2xf32>
    %108 = arith.cmpf ogt, %107, %102 : vector<8x2xf32>
    %109 = arith.select %108, %107, %102 : vector<8x2xi1>, vector<8x2xf32>
    %c4_i32_36 = arith.constant 4 : i32
    %110 = vector.broadcast %c4_i32_36 : i32 to vector<8x2xi32>
    %111 = arith.select %108, %110, %104 : vector<8x2xi1>, vector<8x2xi32>
    %112 = vector.extract_strided_slice %79 {offsets = [5, 0], sizes = [1, 2], strides = [1, 1]} : vector<8x2xf32> to vector<1x2xf32>
    %113 = vector.broadcast %112 : vector<1x2xf32> to vector<8x2xf32>
    %114 = arith.addf %113, %14 : vector<8x2xf32>
    %115 = arith.cmpf ogt, %114, %109 : vector<8x2xf32>
    %116 = arith.select %115, %114, %109 : vector<8x2xi1>, vector<8x2xf32>
    %c5_i32_37 = arith.constant 5 : i32
    %117 = vector.broadcast %c5_i32_37 : i32 to vector<8x2xi32>
    %118 = arith.select %115, %117, %111 : vector<8x2xi1>, vector<8x2xi32>
    %119 = vector.extract_strided_slice %79 {offsets = [6, 0], sizes = [1, 2], strides = [1, 1]} : vector<8x2xf32> to vector<1x2xf32>
    %120 = vector.broadcast %119 : vector<1x2xf32> to vector<8x2xf32>
    %121 = arith.addf %120, %16 : vector<8x2xf32>
    %122 = arith.cmpf ogt, %121, %116 : vector<8x2xf32>
    %123 = arith.select %122, %121, %116 : vector<8x2xi1>, vector<8x2xf32>
    %c6_i32_38 = arith.constant 6 : i32
    %124 = vector.broadcast %c6_i32_38 : i32 to vector<8x2xi32>
    %125 = arith.select %122, %124, %118 : vector<8x2xi1>, vector<8x2xi32>
    %126 = arith.trunci %125 : vector<8x2xi32> to vector<8x2xi8>
    %c1_39 = arith.constant 1 : index
    %c0_40 = arith.constant 0 : index
    %c0_41 = arith.constant 0 : index
    %127 = vector.load %arg5[%c1_39, %c0_40, %c0_41] : memref<8x8x2xi8, #tpu.memory_space<vmem>>, vector<1x8x2xi8>
    %128 = vector.shape_cast %127 : vector<1x8x2xi8> to vector<8x2xi8>
    %129 = vector.shape_cast %126 : vector<8x2xi8> to vector<1x8x2xi8>
    tpu.vector_store %arg5[%c1_39, %c0_40, %c0_41], %129 {strides = array<i32>} : memref<8x8x2xi8, #tpu.memory_space<vmem>>, vector<1x8x2xi8>,
    %c1_42 = arith.constant 1 : index
    %c0_43 = arith.constant 0 : index
    %c0_44 = arith.constant 0 : index
    %130 = vector.load %arg3[%c1_42, %c0_43, %c0_44] : memref<8x8x2xf32, #tpu.memory_space<vmem>>, vector<1x8x2xf32>
    %131 = vector.shape_cast %130 : vector<1x8x2xf32> to vector<8x2xf32>
    %132 = arith.addf %123, %131 : vector<8x2xf32>
    %c1_45 = arith.constant 1 : index
    %c0_46 = arith.constant 0 : index
    %c0_47 = arith.constant 0 : index
    %133 = vector.load %arg2[%c1_45, %c0_46, %c0_47] : memref<8x1x2xi32, #tpu.memory_space<vmem>>, vector<1x1x2xi32>
    %134 = vector.shape_cast %133 : vector<1x1x2xi32> to vector<1x2xi32>
    %c0_i32_48 = arith.constant 0 : i32
    %135 = vector.broadcast %c0_i32_48 : i32 to vector<1x2xi32>
    %136 = arith.cmpi sgt, %134, %135 : vector<1x2xi32>
    %137 = vector.shape_cast %136 : vector<1x2xi1> to vector<1x2xi1>
    %138 = vector.broadcast %137 : vector<1x2xi1> to vector<8x2xi1>
    %139 = arith.select %138, %132, %79 : vector<8x2xi1>, vector<8x2xf32>
    %c0_49 = arith.constant 0 : index
    %c0_50 = arith.constant 0 : index
    %140 = vector.load %arg8[%c0_49, %c0_50] : memref<8x2xf32, #tpu.memory_space<vmem>>, vector<8x2xf32>
    tpu.vector_store %arg8[%c0_49, %c0_50], %139 {strides = array<i32>} : memref<8x2xf32, #tpu.memory_space<vmem>>, vector<8x2xf32>,
    %c0_51 = arith.constant 0 : index
    %c0_52 = arith.constant 0 : index
    %141 = vector.load %arg8[%c0_51, %c0_52] : memref<8x2xf32, #tpu.memory_space<vmem>>, vector<8x2xf32>
    %142 = vector.extract_strided_slice %141 {offsets = [0, 0], sizes = [1, 2], strides = [1, 1]} : vector<8x2xf32> to vector<1x2xf32>
    %143 = vector.broadcast %142 : vector<1x2xf32> to vector<8x2xf32>
    %144 = arith.addf %143, %4 : vector<8x2xf32>
    %c0_i32_53 = arith.constant 0 : i32
    %145 = vector.broadcast %c0_i32_53 : i32 to vector<8x2xi32>
    %146 = vector.extract_strided_slice %141 {offsets = [1, 0], sizes = [1, 2], strides = [1, 1]} : vector<8x2xf32> to vector<1x2xf32>
    %147 = vector.broadcast %146 : vector<1x2xf32> to vector<8x2xf32>
    %148 = arith.addf %147, %6 : vector<8x2xf32>
    %149 = arith.cmpf ogt, %148, %144 : vector<8x2xf32>
    %150 = arith.select %149, %148, %144 : vector<8x2xi1>, vector<8x2xf32>
    %c1_i32_54 = arith.constant 1 : i32
    %151 = vector.broadcast %c1_i32_54 : i32 to vector<8x2xi32>
    %152 = arith.select %149, %151, %145 : vector<8x2xi1>, vector<8x2xi32>
    %153 = vector.extract_strided_slice %141 {offsets = [2, 0], sizes = [1, 2], strides = [1, 1]} : vector<8x2xf32> to vector<1x2xf32>
    %154 = vector.broadcast %153 : vector<1x2xf32> to vector<8x2xf32>
    %155 = arith.addf %154, %8 : vector<8x2xf32>
    %156 = arith.cmpf ogt, %155, %150 : vector<8x2xf32>
    %157 = arith.select %156, %155, %150 : vector<8x2xi1>, vector<8x2xf32>
    %c2_i32_55 = arith.constant 2 : i32
    %158 = vector.broadcast %c2_i32_55 : i32 to vector<8x2xi32>
    %159 = arith.select %156, %158, %152 : vector<8x2xi1>, vector<8x2xi32>
    %160 = vector.extract_strided_slice %141 {offsets = [3, 0], sizes = [1, 2], strides = [1, 1]} : vector<8x2xf32> to vector<1x2xf32>
    %161 = vector.broadcast %160 : vector<1x2xf32> to vector<8x2xf32>
    %162 = arith.addf %161, %10 : vector<8x2xf32>
    %163 = arith.cmpf ogt, %162, %157 : vector<8x2xf32>
    %164 = arith.select %163, %162, %157 : vector<8x2xi1>, vector<8x2xf32>
    %c3_i32_56 = arith.constant 3 : i32
    %165 = vector.broadcast %c3_i32_56 : i32 to vector<8x2xi32>
    %166 = arith.select %163, %165, %159 : vector<8x2xi1>, vector<8x2xi32>
    %167 = vector.extract_strided_slice %141 {offsets = [4, 0], sizes = [1, 2], strides = [1, 1]} : vector<8x2xf32> to vector<1x2xf32>
    %168 = vector.broadcast %167 : vector<1x2xf32> to vector<8x2xf32>
    %169 = arith.addf %168, %12 : vector<8x2xf32>
    %170 = arith.cmpf ogt, %169, %164 : vector<8x2xf32>
    %171 = arith.select %170, %169, %164 : vector<8x2xi1>, vector<8x2xf32>
    %c4_i32_57 = arith.constant 4 : i32
    %172 = vector.broadcast %c4_i32_57 : i32 to vector<8x2xi32>
    %173 = arith.select %170, %172, %166 : vector<8x2xi1>, vector<8x2xi32>
    %174 = vector.extract_strided_slice %141 {offsets = [5, 0], sizes = [1, 2], strides = [1, 1]} : vector<8x2xf32> to vector<1x2xf32>
    %175 = vector.broadcast %174 : vector<1x2xf32> to vector<8x2xf32>
    %176 = arith.addf %175, %14 : vector<8x2xf32>
    %177 = arith.cmpf ogt, %176, %171 : vector<8x2xf32>
    %178 = arith.select %177, %176, %171 : vector<8x2xi1>, vector<8x2xf32>
    %c5_i32_58 = arith.constant 5 : i32
    %179 = vector.broadcast %c5_i32_58 : i32 to vector<8x2xi32>
    %180 = arith.select %177, %179, %173 : vector<8x2xi1>, vector<8x2xi32>
    %181 = vector.extract_strided_slice %141 {offsets = [6, 0], sizes = [1, 2], strides = [1, 1]} : vector<8x2xf32> to vector<1x2xf32>
    %182 = vector.broadcast %181 : vector<1x2xf32> to vector<8x2xf32>
    %183 = arith.addf %182, %16 : vector<8x2xf32>
    %184 = arith.cmpf ogt, %183, %178 : vector<8x2xf32>
    %185 = arith.select %184, %183, %178 : vector<8x2xi1>, vector<8x2xf32>
    %c6_i32_59 = arith.constant 6 : i32
    %186 = vector.broadcast %c6_i32_59 : i32 to vector<8x2xi32>
    %187 = arith.select %184, %186, %180 : vector<8x2xi1>, vector<8x2xi32>
    %188 = arith.trunci %187 : vector<8x2xi32> to vector<8x2xi8>
    %c2_60 = arith.constant 2 : index
    %c0_61 = arith.constant 0 : index
    %c0_62 = arith.constant 0 : index
    %189 = vector.load %arg5[%c2_60, %c0_61, %c0_62] : memref<8x8x2xi8, #tpu.memory_space<vmem>>, vector<1x8x2xi8>
    %190 = vector.shape_cast %189 : vector<1x8x2xi8> to vector<8x2xi8>
    %191 = vector.shape_cast %188 : vector<8x2xi8> to vector<1x8x2xi8>
    tpu.vector_store %arg5[%c2_60, %c0_61, %c0_62], %191 {strides = array<i32>} : memref<8x8x2xi8, #tpu.memory_space<vmem>>, vector<1x8x2xi8>,
    %c2_63 = arith.constant 2 : index
    %c0_64 = arith.constant 0 : index
    %c0_65 = arith.constant 0 : index
    %192 = vector.load %arg3[%c2_63, %c0_64, %c0_65] : memref<8x8x2xf32, #tpu.memory_space<vmem>>, vector<1x8x2xf32>
    %193 = vector.shape_cast %192 : vector<1x8x2xf32> to vector<8x2xf32>
    %194 = arith.addf %185, %193 : vector<8x2xf32>
    %c2_66 = arith.constant 2 : index
    %c0_67 = arith.constant 0 : index
    %c0_68 = arith.constant 0 : index
    %195 = vector.load %arg2[%c2_66, %c0_67, %c0_68] : memref<8x1x2xi32, #tpu.memory_space<vmem>>, vector<1x1x2xi32>
    %196 = vector.shape_cast %195 : vector<1x1x2xi32> to vector<1x2xi32>
    %c0_i32_69 = arith.constant 0 : i32
    %197 = vector.broadcast %c0_i32_69 : i32 to vector<1x2xi32>
    %198 = arith.cmpi sgt, %196, %197 : vector<1x2xi32>
    %199 = vector.shape_cast %198 : vector<1x2xi1> to vector<1x2xi1>
    %200 = vector.broadcast %199 : vector<1x2xi1> to vector<8x2xi1>
    %201 = arith.select %200, %194, %141 : vector<8x2xi1>, vector<8x2xf32>
    %c0_70 = arith.constant 0 : index
    %c0_71 = arith.constant 0 : index
    %202 = vector.load %arg8[%c0_70, %c0_71] : memref<8x2xf32, #tpu.memory_space<vmem>>, vector<8x2xf32>
    tpu.vector_store %arg8[%c0_70, %c0_71], %201 {strides = array<i32>} : memref<8x2xf32, #tpu.memory_space<vmem>>, vector<8x2xf32>,
    %c0_72 = arith.constant 0 : index
    %c0_73 = arith.constant 0 : index
    %203 = vector.load %arg8[%c0_72, %c0_73] : memref<8x2xf32, #tpu.memory_space<vmem>>, vector<8x2xf32>
    %204 = vector.extract_strided_slice %203 {offsets = [0, 0], sizes = [1, 2], strides = [1, 1]} : vector<8x2xf32> to vector<1x2xf32>
    %205 = vector.broadcast %204 : vector<1x2xf32> to vector<8x2xf32>
    %206 = arith.addf %205, %4 : vector<8x2xf32>
    %c0_i32_74 = arith.constant 0 : i32
    %207 = vector.broadcast %c0_i32_74 : i32 to vector<8x2xi32>
    %208 = vector.extract_strided_slice %203 {offsets = [1, 0], sizes = [1, 2], strides = [1, 1]} : vector<8x2xf32> to vector<1x2xf32>
    %209 = vector.broadcast %208 : vector<1x2xf32> to vector<8x2xf32>
    %210 = arith.addf %209, %6 : vector<8x2xf32>
    %211 = arith.cmpf ogt, %210, %206 : vector<8x2xf32>
    %212 = arith.select %211, %210, %206 : vector<8x2xi1>, vector<8x2xf32>
    %c1_i32_75 = arith.constant 1 : i32
    %213 = vector.broadcast %c1_i32_75 : i32 to vector<8x2xi32>
    %214 = arith.select %211, %213, %207 : vector<8x2xi1>, vector<8x2xi32>
    %215 = vector.extract_strided_slice %203 {offsets = [2, 0], sizes = [1, 2], strides = [1, 1]} : vector<8x2xf32> to vector<1x2xf32>
    %216 = vector.broadcast %215 : vector<1x2xf32> to vector<8x2xf32>
    %217 = arith.addf %216, %8 : vector<8x2xf32>
    %218 = arith.cmpf ogt, %217, %212 : vector<8x2xf32>
    %219 = arith.select %218, %217, %212 : vector<8x2xi1>, vector<8x2xf32>
    %c2_i32_76 = arith.constant 2 : i32
    %220 = vector.broadcast %c2_i32_76 : i32 to vector<8x2xi32>
    %221 = arith.select %218, %220, %214 : vector<8x2xi1>, vector<8x2xi32>
    %222 = vector.extract_strided_slice %203 {offsets = [3, 0], sizes = [1, 2], strides = [1, 1]} : vector<8x2xf32> to vector<1x2xf32>
    %223 = vector.broadcast %222 : vector<1x2xf32> to vector<8x2xf32>
    %224 = arith.addf %223, %10 : vector<8x2xf32>
    %225 = arith.cmpf ogt, %224, %219 : vector<8x2xf32>
    %226 = arith.select %225, %224, %219 : vector<8x2xi1>, vector<8x2xf32>
    %c3_i32_77 = arith.constant 3 : i32
    %227 = vector.broadcast %c3_i32_77 : i32 to vector<8x2xi32>
    %228 = arith.select %225, %227, %221 : vector<8x2xi1>, vector<8x2xi32>
    %229 = vector.extract_strided_slice %203 {offsets = [4, 0], sizes = [1, 2], strides = [1, 1]} : vector<8x2xf32> to vector<1x2xf32>
    %230 = vector.broadcast %229 : vector<1x2xf32> to vector<8x2xf32>
    %231 = arith.addf %230, %12 : vector<8x2xf32>
    %232 = arith.cmpf ogt, %231, %226 : vector<8x2xf32>
    %233 = arith.select %232, %231, %226 : vector<8x2xi1>, vector<8x2xf32>
    %c4_i32_78 = arith.constant 4 : i32
    %234 = vector.broadcast %c4_i32_78 : i32 to vector<8x2xi32>
    %235 = arith.select %232, %234, %228 : vector<8x2xi1>, vector<8x2xi32>
    %236 = vector.extract_strided_slice %203 {offsets = [5, 0], sizes = [1, 2], strides = [1, 1]} : vector<8x2xf32> to vector<1x2xf32>
    %237 = vector.broadcast %236 : vector<1x2xf32> to vector<8x2xf32>
    %238 = arith.addf %237, %14 : vector<8x2xf32>
    %239 = arith.cmpf ogt, %238, %233 : vector<8x2xf32>
    %240 = arith.select %239, %238, %233 : vector<8x2xi1>, vector<8x2xf32>
    %c5_i32_79 = arith.constant 5 : i32
    %241 = vector.broadcast %c5_i32_79 : i32 to vector<8x2xi32>
    %242 = arith.select %239, %241, %235 : vector<8x2xi1>, vector<8x2xi32>
    %243 = vector.extract_strided_slice %203 {offsets = [6, 0], sizes = [1, 2], strides = [1, 1]} : vector<8x2xf32> to vector<1x2xf32>
    %244 = vector.broadcast %243 : vector<1x2xf32> to vector<8x2xf32>
    %245 = arith.addf %244, %16 : vector<8x2xf32>
    %246 = arith.cmpf ogt, %245, %240 : vector<8x2xf32>
    %247 = arith.select %246, %245, %240 : vector<8x2xi1>, vector<8x2xf32>
    %c6_i32_80 = arith.constant 6 : i32
    %248 = vector.broadcast %c6_i32_80 : i32 to vector<8x2xi32>
    %249 = arith.select %246, %248, %242 : vector<8x2xi1>, vector<8x2xi32>
    %250 = arith.trunci %249 : vector<8x2xi32> to vector<8x2xi8>
    %c3_81 = arith.constant 3 : index
    %c0_82 = arith.constant 0 : index
    %c0_83 = arith.constant 0 : index
    %251 = vector.load %arg5[%c3_81, %c0_82, %c0_83] : memref<8x8x2xi8, #tpu.memory_space<vmem>>, vector<1x8x2xi8>
    %252 = vector.shape_cast %251 : vector<1x8x2xi8> to vector<8x2xi8>
    %253 = vector.shape_cast %250 : vector<8x2xi8> to vector<1x8x2xi8>
    tpu.vector_store %arg5[%c3_81, %c0_82, %c0_83], %253 {strides = array<i32>} : memref<8x8x2xi8, #tpu.memory_space<vmem>>, vector<1x8x2xi8>,
    %c3_84 = arith.constant 3 : index
    %c0_85 = arith.constant 0 : index
    %c0_86 = arith.constant 0 : index
    %254 = vector.load %arg3[%c3_84, %c0_85, %c0_86] : memref<8x8x2xf32, #tpu.memory_space<vmem>>, vector<1x8x2xf32>
    %255 = vector.shape_cast %254 : vector<1x8x2xf32> to vector<8x2xf32>
    %256 = arith.addf %247, %255 : vector<8x2xf32>
    %c3_87 = arith.constant 3 : index
    %c0_88 = arith.constant 0 : index
    %c0_89 = arith.constant 0 : index
    %257 = vector.load %arg2[%c3_87, %c0_88, %c0_89] : memref<8x1x2xi32, #tpu.memory_space<vmem>>, vector<1x1x2xi32>
    %258 = vector.shape_cast %257 : vector<1x1x2xi32> to vector<1x2xi32>
    %c0_i32_90 = arith.constant 0 : i32
    %259 = vector.broadcast %c0_i32_90 : i32 to vector<1x2xi32>
    %260 = arith.cmpi sgt, %258, %259 : vector<1x2xi32>
    %261 = vector.shape_cast %260 : vector<1x2xi1> to vector<1x2xi1>
    %262 = vector.broadcast %261 : vector<1x2xi1> to vector<8x2xi1>
    %263 = arith.select %262, %256, %203 : vector<8x2xi1>, vector<8x2xf32>
    %c0_91 = arith.constant 0 : index
    %c0_92 = arith.constant 0 : index
    %264 = vector.load %arg8[%c0_91, %c0_92] : memref<8x2xf32, #tpu.memory_space<vmem>>, vector<8x2xf32>
    tpu.vector_store %arg8[%c0_91, %c0_92], %263 {strides = array<i32>} : memref<8x2xf32, #tpu.memory_space<vmem>>, vector<8x2xf32>,
    %c0_93 = arith.constant 0 : index
    %c0_94 = arith.constant 0 : index
    %265 = vector.load %arg8[%c0_93, %c0_94] : memref<8x2xf32, #tpu.memory_space<vmem>>, vector<8x2xf32>
    %266 = vector.extract_strided_slice %265 {offsets = [0, 0], sizes = [1, 2], strides = [1, 1]} : vector<8x2xf32> to vector<1x2xf32>
    %267 = vector.broadcast %266 : vector<1x2xf32> to vector<8x2xf32>
    %268 = arith.addf %267, %4 : vector<8x2xf32>
    %c0_i32_95 = arith.constant 0 : i32
    %269 = vector.broadcast %c0_i32_95 : i32 to vector<8x2xi32>
    %270 = vector.extract_strided_slice %265 {offsets = [1, 0], sizes = [1, 2], strides = [1, 1]} : vector<8x2xf32> to vector<1x2xf32>
    %271 = vector.broadcast %270 : vector<1x2xf32> to vector<8x2xf32>
    %272 = arith.addf %271, %6 : vector<8x2xf32>
    %273 = arith.cmpf ogt, %272, %268 : vector<8x2xf32>
    %274 = arith.select %273, %272, %268 : vector<8x2xi1>, vector<8x2xf32>
    %c1_i32_96 = arith.constant 1 : i32
    %275 = vector.broadcast %c1_i32_96 : i32 to vector<8x2xi32>
    %276 = arith.select %273, %275, %269 : vector<8x2xi1>, vector<8x2xi32>
    %277 = vector.extract_strided_slice %265 {offsets = [2, 0], sizes = [1, 2], strides = [1, 1]} : vector<8x2xf32> to vector<1x2xf32>
    %278 = vector.broadcast %277 : vector<1x2xf32> to vector<8x2xf32>
    %279 = arith.addf %278, %8 : vector<8x2xf32>
    %280 = arith.cmpf ogt, %279, %274 : vector<8x2xf32>
    %281 = arith.select %280, %279, %274 : vector<8x2xi1>, vector<8x2xf32>
    %c2_i32_97 = arith.constant 2 : i32
    %282 = vector.broadcast %c2_i32_97 : i32 to vector<8x2xi32>
    %283 = arith.select %280, %282, %276 : vector<8x2xi1>, vector<8x2xi32>
    %284 = vector.extract_strided_slice %265 {offsets = [3, 0], sizes = [1, 2], strides = [1, 1]} : vector<8x2xf32> to vector<1x2xf32>
    %285 = vector.broadcast %284 : vector<1x2xf32> to vector<8x2xf32>
    %286 = arith.addf %285, %10 : vector<8x2xf32>
    %287 = arith.cmpf ogt, %286, %281 : vector<8x2xf32>
    %288 = arith.select %287, %286, %281 : vector<8x2xi1>, vector<8x2xf32>
    %c3_i32_98 = arith.constant 3 : i32
    %289 = vector.broadcast %c3_i32_98 : i32 to vector<8x2xi32>
    %290 = arith.select %287, %289, %283 : vector<8x2xi1>, vector<8x2xi32>
    %291 = vector.extract_strided_slice %265 {offsets = [4, 0], sizes = [1, 2], strides = [1, 1]} : vector<8x2xf32> to vector<1x2xf32>
    %292 = vector.broadcast %291 : vector<1x2xf32> to vector<8x2xf32>
    %293 = arith.addf %292, %12 : vector<8x2xf32>
    %294 = arith.cmpf ogt, %293, %288 : vector<8x2xf32>
    %295 = arith.select %294, %293, %288 : vector<8x2xi1>, vector<8x2xf32>
    %c4_i32_99 = arith.constant 4 : i32
    %296 = vector.broadcast %c4_i32_99 : i32 to vector<8x2xi32>
    %297 = arith.select %294, %296, %290 : vector<8x2xi1>, vector<8x2xi32>
    %298 = vector.extract_strided_slice %265 {offsets = [5, 0], sizes = [1, 2], strides = [1, 1]} : vector<8x2xf32> to vector<1x2xf32>
    %299 = vector.broadcast %298 : vector<1x2xf32> to vector<8x2xf32>
    %300 = arith.addf %299, %14 : vector<8x2xf32>
    %301 = arith.cmpf ogt, %300, %295 : vector<8x2xf32>
    %302 = arith.select %301, %300, %295 : vector<8x2xi1>, vector<8x2xf32>
    %c5_i32_100 = arith.constant 5 : i32
    %303 = vector.broadcast %c5_i32_100 : i32 to vector<8x2xi32>
    %304 = arith.select %301, %303, %297 : vector<8x2xi1>, vector<8x2xi32>
    %305 = vector.extract_strided_slice %265 {offsets = [6, 0], sizes = [1, 2], strides = [1, 1]} : vector<8x2xf32> to vector<1x2xf32>
    %306 = vector.broadcast %305 : vector<1x2xf32> to vector<8x2xf32>
    %307 = arith.addf %306, %16 : vector<8x2xf32>
    %308 = arith.cmpf ogt, %307, %302 : vector<8x2xf32>
    %309 = arith.select %308, %307, %302 : vector<8x2xi1>, vector<8x2xf32>
    %c6_i32_101 = arith.constant 6 : i32
    %310 = vector.broadcast %c6_i32_101 : i32 to vector<8x2xi32>
    %311 = arith.select %308, %310, %304 : vector<8x2xi1>, vector<8x2xi32>
    %312 = arith.trunci %311 : vector<8x2xi32> to vector<8x2xi8>
    %c4_102 = arith.constant 4 : index
    %c0_103 = arith.constant 0 : index
    %c0_104 = arith.constant 0 : index
    %313 = vector.load %arg5[%c4_102, %c0_103, %c0_104] : memref<8x8x2xi8, #tpu.memory_space<vmem>>, vector<1x8x2xi8>
    %314 = vector.shape_cast %313 : vector<1x8x2xi8> to vector<8x2xi8>
    %315 = vector.shape_cast %312 : vector<8x2xi8> to vector<1x8x2xi8>
    tpu.vector_store %arg5[%c4_102, %c0_103, %c0_104], %315 {strides = array<i32>} : memref<8x8x2xi8, #tpu.memory_space<vmem>>, vector<1x8x2xi8>,
    %c4_105 = arith.constant 4 : index
    %c0_106 = arith.constant 0 : index
    %c0_107 = arith.constant 0 : index
    %316 = vector.load %arg3[%c4_105, %c0_106, %c0_107] : memref<8x8x2xf32, #tpu.memory_space<vmem>>, vector<1x8x2xf32>
    %317 = vector.shape_cast %316 : vector<1x8x2xf32> to vector<8x2xf32>
    %318 = arith.addf %309, %317 : vector<8x2xf32>
    %c4_108 = arith.constant 4 : index
    %c0_109 = arith.constant 0 : index
    %c0_110 = arith.constant 0 : index
    %319 = vector.load %arg2[%c4_108, %c0_109, %c0_110] : memref<8x1x2xi32, #tpu.memory_space<vmem>>, vector<1x1x2xi32>
    %320 = vector.shape_cast %319 : vector<1x1x2xi32> to vector<1x2xi32>
    %c0_i32_111 = arith.constant 0 : i32
    %321 = vector.broadcast %c0_i32_111 : i32 to vector<1x2xi32>
    %322 = arith.cmpi sgt, %320, %321 : vector<1x2xi32>
    %323 = vector.shape_cast %322 : vector<1x2xi1> to vector<1x2xi1>
    %324 = vector.broadcast %323 : vector<1x2xi1> to vector<8x2xi1>
    %325 = arith.select %324, %318, %265 : vector<8x2xi1>, vector<8x2xf32>
    %c0_112 = arith.constant 0 : index
    %c0_113 = arith.constant 0 : index
    %326 = vector.load %arg8[%c0_112, %c0_113] : memref<8x2xf32, #tpu.memory_space<vmem>>, vector<8x2xf32>
    tpu.vector_store %arg8[%c0_112, %c0_113], %325 {strides = array<i32>} : memref<8x2xf32, #tpu.memory_space<vmem>>, vector<8x2xf32>,
    %c0_114 = arith.constant 0 : index
    %c0_115 = arith.constant 0 : index
    %327 = vector.load %arg8[%c0_114, %c0_115] : memref<8x2xf32, #tpu.memory_space<vmem>>, vector<8x2xf32>
    %328 = vector.extract_strided_slice %327 {offsets = [0, 0], sizes = [1, 2], strides = [1, 1]} : vector<8x2xf32> to vector<1x2xf32>
    %329 = vector.broadcast %328 : vector<1x2xf32> to vector<8x2xf32>
    %330 = arith.addf %329, %4 : vector<8x2xf32>
    %c0_i32_116 = arith.constant 0 : i32
    %331 = vector.broadcast %c0_i32_116 : i32 to vector<8x2xi32>
    %332 = vector.extract_strided_slice %327 {offsets = [1, 0], sizes = [1, 2], strides = [1, 1]} : vector<8x2xf32> to vector<1x2xf32>
    %333 = vector.broadcast %332 : vector<1x2xf32> to vector<8x2xf32>
    %334 = arith.addf %333, %6 : vector<8x2xf32>
    %335 = arith.cmpf ogt, %334, %330 : vector<8x2xf32>
    %336 = arith.select %335, %334, %330 : vector<8x2xi1>, vector<8x2xf32>
    %c1_i32_117 = arith.constant 1 : i32
    %337 = vector.broadcast %c1_i32_117 : i32 to vector<8x2xi32>
    %338 = arith.select %335, %337, %331 : vector<8x2xi1>, vector<8x2xi32>
    %339 = vector.extract_strided_slice %327 {offsets = [2, 0], sizes = [1, 2], strides = [1, 1]} : vector<8x2xf32> to vector<1x2xf32>
    %340 = vector.broadcast %339 : vector<1x2xf32> to vector<8x2xf32>
    %341 = arith.addf %340, %8 : vector<8x2xf32>
    %342 = arith.cmpf ogt, %341, %336 : vector<8x2xf32>
    %343 = arith.select %342, %341, %336 : vector<8x2xi1>, vector<8x2xf32>
    %c2_i32_118 = arith.constant 2 : i32
    %344 = vector.broadcast %c2_i32_118 : i32 to vector<8x2xi32>
    %345 = arith.select %342, %344, %338 : vector<8x2xi1>, vector<8x2xi32>
    %346 = vector.extract_strided_slice %327 {offsets = [3, 0], sizes = [1, 2], strides = [1, 1]} : vector<8x2xf32> to vector<1x2xf32>
    %347 = vector.broadcast %346 : vector<1x2xf32> to vector<8x2xf32>
    %348 = arith.addf %347, %10 : vector<8x2xf32>
    %349 = arith.cmpf ogt, %348, %343 : vector<8x2xf32>
    %350 = arith.select %349, %348, %343 : vector<8x2xi1>, vector<8x2xf32>
    %c3_i32_119 = arith.constant 3 : i32
    %351 = vector.broadcast %c3_i32_119 : i32 to vector<8x2xi32>
    %352 = arith.select %349, %351, %345 : vector<8x2xi1>, vector<8x2xi32>
    %353 = vector.extract_strided_slice %327 {offsets = [4, 0], sizes = [1, 2], strides = [1, 1]} : vector<8x2xf32> to vector<1x2xf32>
    %354 = vector.broadcast %353 : vector<1x2xf32> to vector<8x2xf32>
    %355 = arith.addf %354, %12 : vector<8x2xf32>
    %356 = arith.cmpf ogt, %355, %350 : vector<8x2xf32>
    %357 = arith.select %356, %355, %350 : vector<8x2xi1>, vector<8x2xf32>
    %c4_i32_120 = arith.constant 4 : i32
    %358 = vector.broadcast %c4_i32_120 : i32 to vector<8x2xi32>
    %359 = arith.select %356, %358, %352 : vector<8x2xi1>, vector<8x2xi32>
    %360 = vector.extract_strided_slice %327 {offsets = [5, 0], sizes = [1, 2], strides = [1, 1]} : vector<8x2xf32> to vector<1x2xf32>
    %361 = vector.broadcast %360 : vector<1x2xf32> to vector<8x2xf32>
    %362 = arith.addf %361, %14 : vector<8x2xf32>
    %363 = arith.cmpf ogt, %362, %357 : vector<8x2xf32>
    %364 = arith.select %363, %362, %357 : vector<8x2xi1>, vector<8x2xf32>
    %c5_i32_121 = arith.constant 5 : i32
    %365 = vector.broadcast %c5_i32_121 : i32 to vector<8x2xi32>
    %366 = arith.select %363, %365, %359 : vector<8x2xi1>, vector<8x2xi32>
    %367 = vector.extract_strided_slice %327 {offsets = [6, 0], sizes = [1, 2], strides = [1, 1]} : vector<8x2xf32> to vector<1x2xf32>
    %368 = vector.broadcast %367 : vector<1x2xf32> to vector<8x2xf32>
    %369 = arith.addf %368, %16 : vector<8x2xf32>
    %370 = arith.cmpf ogt, %369, %364 : vector<8x2xf32>
    %371 = arith.select %370, %369, %364 : vector<8x2xi1>, vector<8x2xf32>
    %c6_i32_122 = arith.constant 6 : i32
    %372 = vector.broadcast %c6_i32_122 : i32 to vector<8x2xi32>
    %373 = arith.select %370, %372, %366 : vector<8x2xi1>, vector<8x2xi32>
    %374 = arith.trunci %373 : vector<8x2xi32> to vector<8x2xi8>
    %c5_123 = arith.constant 5 : index
    %c0_124 = arith.constant 0 : index
    %c0_125 = arith.constant 0 : index
    %375 = vector.load %arg5[%c5_123, %c0_124, %c0_125] : memref<8x8x2xi8, #tpu.memory_space<vmem>>, vector<1x8x2xi8>
    %376 = vector.shape_cast %375 : vector<1x8x2xi8> to vector<8x2xi8>
    %377 = vector.shape_cast %374 : vector<8x2xi8> to vector<1x8x2xi8>
    tpu.vector_store %arg5[%c5_123, %c0_124, %c0_125], %377 {strides = array<i32>} : memref<8x8x2xi8, #tpu.memory_space<vmem>>, vector<1x8x2xi8>,
    %c5_126 = arith.constant 5 : index
    %c0_127 = arith.constant 0 : index
    %c0_128 = arith.constant 0 : index
    %378 = vector.load %arg3[%c5_126, %c0_127, %c0_128] : memref<8x8x2xf32, #tpu.memory_space<vmem>>, vector<1x8x2xf32>
    %379 = vector.shape_cast %378 : vector<1x8x2xf32> to vector<8x2xf32>
    %380 = arith.addf %371, %379 : vector<8x2xf32>
    %c5_129 = arith.constant 5 : index
    %c0_130 = arith.constant 0 : index
    %c0_131 = arith.constant 0 : index
    %381 = vector.load %arg2[%c5_129, %c0_130, %c0_131] : memref<8x1x2xi32, #tpu.memory_space<vmem>>, vector<1x1x2xi32>
    %382 = vector.shape_cast %381 : vector<1x1x2xi32> to vector<1x2xi32>
    %c0_i32_132 = arith.constant 0 : i32
    %383 = vector.broadcast %c0_i32_132 : i32 to vector<1x2xi32>
    %384 = arith.cmpi sgt, %382, %383 : vector<1x2xi32>
    %385 = vector.shape_cast %384 : vector<1x2xi1> to vector<1x2xi1>
    %386 = vector.broadcast %385 : vector<1x2xi1> to vector<8x2xi1>
    %387 = arith.select %386, %380, %327 : vector<8x2xi1>, vector<8x2xf32>
    %c0_133 = arith.constant 0 : index
    %c0_134 = arith.constant 0 : index
    %388 = vector.load %arg8[%c0_133, %c0_134] : memref<8x2xf32, #tpu.memory_space<vmem>>, vector<8x2xf32>
    tpu.vector_store %arg8[%c0_133, %c0_134], %387 {strides = array<i32>} : memref<8x2xf32, #tpu.memory_space<vmem>>, vector<8x2xf32>,
    %c0_135 = arith.constant 0 : index
    %c0_136 = arith.constant 0 : index
    %389 = vector.load %arg8[%c0_135, %c0_136] : memref<8x2xf32, #tpu.memory_space<vmem>>, vector<8x2xf32>
    %390 = vector.extract_strided_slice %389 {offsets = [0, 0], sizes = [1, 2], strides = [1, 1]} : vector<8x2xf32> to vector<1x2xf32>
    %391 = vector.broadcast %390 : vector<1x2xf32> to vector<8x2xf32>
    %392 = arith.addf %391, %4 : vector<8x2xf32>
    %c0_i32_137 = arith.constant 0 : i32
    %393 = vector.broadcast %c0_i32_137 : i32 to vector<8x2xi32>
    %394 = vector.extract_strided_slice %389 {offsets = [1, 0], sizes = [1, 2], strides = [1, 1]} : vector<8x2xf32> to vector<1x2xf32>
    %395 = vector.broadcast %394 : vector<1x2xf32> to vector<8x2xf32>
    %396 = arith.addf %395, %6 : vector<8x2xf32>
    %397 = arith.cmpf ogt, %396, %392 : vector<8x2xf32>
    %398 = arith.select %397, %396, %392 : vector<8x2xi1>, vector<8x2xf32>
    %c1_i32_138 = arith.constant 1 : i32
    %399 = vector.broadcast %c1_i32_138 : i32 to vector<8x2xi32>
    %400 = arith.select %397, %399, %393 : vector<8x2xi1>, vector<8x2xi32>
    %401 = vector.extract_strided_slice %389 {offsets = [2, 0], sizes = [1, 2], strides = [1, 1]} : vector<8x2xf32> to vector<1x2xf32>
    %402 = vector.broadcast %401 : vector<1x2xf32> to vector<8x2xf32>
    %403 = arith.addf %402, %8 : vector<8x2xf32>
    %404 = arith.cmpf ogt, %403, %398 : vector<8x2xf32>
    %405 = arith.select %404, %403, %398 : vector<8x2xi1>, vector<8x2xf32>
    %c2_i32_139 = arith.constant 2 : i32
    %406 = vector.broadcast %c2_i32_139 : i32 to vector<8x2xi32>
    %407 = arith.select %404, %406, %400 : vector<8x2xi1>, vector<8x2xi32>
    %408 = vector.extract_strided_slice %389 {offsets = [3, 0], sizes = [1, 2], strides = [1, 1]} : vector<8x2xf32> to vector<1x2xf32>
    %409 = vector.broadcast %408 : vector<1x2xf32> to vector<8x2xf32>
    %410 = arith.addf %409, %10 : vector<8x2xf32>
    %411 = arith.cmpf ogt, %410, %405 : vector<8x2xf32>
    %412 = arith.select %411, %410, %405 : vector<8x2xi1>, vector<8x2xf32>
    %c3_i32_140 = arith.constant 3 : i32
    %413 = vector.broadcast %c3_i32_140 : i32 to vector<8x2xi32>
    %414 = arith.select %411, %413, %407 : vector<8x2xi1>, vector<8x2xi32>
    %415 = vector.extract_strided_slice %389 {offsets = [4, 0], sizes = [1, 2], strides = [1, 1]} : vector<8x2xf32> to vector<1x2xf32>
    %416 = vector.broadcast %415 : vector<1x2xf32> to vector<8x2xf32>
    %417 = arith.addf %416, %12 : vector<8x2xf32>
    %418 = arith.cmpf ogt, %417, %412 : vector<8x2xf32>
    %419 = arith.select %418, %417, %412 : vector<8x2xi1>, vector<8x2xf32>
    %c4_i32_141 = arith.constant 4 : i32
    %420 = vector.broadcast %c4_i32_141 : i32 to vector<8x2xi32>
    %421 = arith.select %418, %420, %414 : vector<8x2xi1>, vector<8x2xi32>
    %422 = vector.extract_strided_slice %389 {offsets = [5, 0], sizes = [1, 2], strides = [1, 1]} : vector<8x2xf32> to vector<1x2xf32>
    %423 = vector.broadcast %422 : vector<1x2xf32> to vector<8x2xf32>
    %424 = arith.addf %423, %14 : vector<8x2xf32>
    %425 = arith.cmpf ogt, %424, %419 : vector<8x2xf32>
    %426 = arith.select %425, %424, %419 : vector<8x2xi1>, vector<8x2xf32>
    %c5_i32_142 = arith.constant 5 : i32
    %427 = vector.broadcast %c5_i32_142 : i32 to vector<8x2xi32>
    %428 = arith.select %425, %427, %421 : vector<8x2xi1>, vector<8x2xi32>
    %429 = vector.extract_strided_slice %389 {offsets = [6, 0], sizes = [1, 2], strides = [1, 1]} : vector<8x2xf32> to vector<1x2xf32>
    %430 = vector.broadcast %429 : vector<1x2xf32> to vector<8x2xf32>
    %431 = arith.addf %430, %16 : vector<8x2xf32>
    %432 = arith.cmpf ogt, %431, %426 : vector<8x2xf32>
    %433 = arith.select %432, %431, %426 : vector<8x2xi1>, vector<8x2xf32>
    %c6_i32_143 = arith.constant 6 : i32
    %434 = vector.broadcast %c6_i32_143 : i32 to vector<8x2xi32>
    %435 = arith.select %432, %434, %428 : vector<8x2xi1>, vector<8x2xi32>
    %436 = arith.trunci %435 : vector<8x2xi32> to vector<8x2xi8>
    %c6_144 = arith.constant 6 : index
    %c0_145 = arith.constant 0 : index
    %c0_146 = arith.constant 0 : index
    %437 = vector.load %arg5[%c6_144, %c0_145, %c0_146] : memref<8x8x2xi8, #tpu.memory_space<vmem>>, vector<1x8x2xi8>
    %438 = vector.shape_cast %437 : vector<1x8x2xi8> to vector<8x2xi8>
    %439 = vector.shape_cast %436 : vector<8x2xi8> to vector<1x8x2xi8>
    tpu.vector_store %arg5[%c6_144, %c0_145, %c0_146], %439 {strides = array<i32>} : memref<8x8x2xi8, #tpu.memory_space<vmem>>, vector<1x8x2xi8>,
    %c6_147 = arith.constant 6 : index
    %c0_148 = arith.constant 0 : index
    %c0_149 = arith.constant 0 : index
    %440 = vector.load %arg3[%c6_147, %c0_148, %c0_149] : memref<8x8x2xf32, #tpu.memory_space<vmem>>, vector<1x8x2xf32>
    %441 = vector.shape_cast %440 : vector<1x8x2xf32> to vector<8x2xf32>
    %442 = arith.addf %433, %441 : vector<8x2xf32>
    %c6_150 = arith.constant 6 : index
    %c0_151 = arith.constant 0 : index
    %c0_152 = arith.constant 0 : index
    %443 = vector.load %arg2[%c6_150, %c0_151, %c0_152] : memref<8x1x2xi32, #tpu.memory_space<vmem>>, vector<1x1x2xi32>
    %444 = vector.shape_cast %443 : vector<1x1x2xi32> to vector<1x2xi32>
    %c0_i32_153 = arith.constant 0 : i32
    %445 = vector.broadcast %c0_i32_153 : i32 to vector<1x2xi32>
    %446 = arith.cmpi sgt, %444, %445 : vector<1x2xi32>
    %447 = vector.shape_cast %446 : vector<1x2xi1> to vector<1x2xi1>
    %448 = vector.broadcast %447 : vector<1x2xi1> to vector<8x2xi1>
    %449 = arith.select %448, %442, %389 : vector<8x2xi1>, vector<8x2xf32>
    %c0_154 = arith.constant 0 : index
    %c0_155 = arith.constant 0 : index
    %450 = vector.load %arg8[%c0_154, %c0_155] : memref<8x2xf32, #tpu.memory_space<vmem>>, vector<8x2xf32>
    tpu.vector_store %arg8[%c0_154, %c0_155], %449 {strides = array<i32>} : memref<8x2xf32, #tpu.memory_space<vmem>>, vector<8x2xf32>,
    %c0_156 = arith.constant 0 : index
    %c0_157 = arith.constant 0 : index
    %451 = vector.load %arg8[%c0_156, %c0_157] : memref<8x2xf32, #tpu.memory_space<vmem>>, vector<8x2xf32>
    %452 = vector.extract_strided_slice %451 {offsets = [0, 0], sizes = [1, 2], strides = [1, 1]} : vector<8x2xf32> to vector<1x2xf32>
    %453 = vector.broadcast %452 : vector<1x2xf32> to vector<8x2xf32>
    %454 = arith.addf %453, %4 : vector<8x2xf32>
    %c0_i32_158 = arith.constant 0 : i32
    %455 = vector.broadcast %c0_i32_158 : i32 to vector<8x2xi32>
    %456 = vector.extract_strided_slice %451 {offsets = [1, 0], sizes = [1, 2], strides = [1, 1]} : vector<8x2xf32> to vector<1x2xf32>
    %457 = vector.broadcast %456 : vector<1x2xf32> to vector<8x2xf32>
    %458 = arith.addf %457, %6 : vector<8x2xf32>
    %459 = arith.cmpf ogt, %458, %454 : vector<8x2xf32>
    %460 = arith.select %459, %458, %454 : vector<8x2xi1>, vector<8x2xf32>
    %c1_i32_159 = arith.constant 1 : i32
    %461 = vector.broadcast %c1_i32_159 : i32 to vector<8x2xi32>
    %462 = arith.select %459, %461, %455 : vector<8x2xi1>, vector<8x2xi32>
    %463 = vector.extract_strided_slice %451 {offsets = [2, 0], sizes = [1, 2], strides = [1, 1]} : vector<8x2xf32> to vector<1x2xf32>
    %464 = vector.broadcast %463 : vector<1x2xf32> to vector<8x2xf32>
    %465 = arith.addf %464, %8 : vector<8x2xf32>
    %466 = arith.cmpf ogt, %465, %460 : vector<8x2xf32>
    %467 = arith.select %466, %465, %460 : vector<8x2xi1>, vector<8x2xf32>
    %c2_i32_160 = arith.constant 2 : i32
    %468 = vector.broadcast %c2_i32_160 : i32 to vector<8x2xi32>
    %469 = arith.select %466, %468, %462 : vector<8x2xi1>, vector<8x2xi32>
    %470 = vector.extract_strided_slice %451 {offsets = [3, 0], sizes = [1, 2], strides = [1, 1]} : vector<8x2xf32> to vector<1x2xf32>
    %471 = vector.broadcast %470 : vector<1x2xf32> to vector<8x2xf32>
    %472 = arith.addf %471, %10 : vector<8x2xf32>
    %473 = arith.cmpf ogt, %472, %467 : vector<8x2xf32>
    %474 = arith.select %473, %472, %467 : vector<8x2xi1>, vector<8x2xf32>
    %c3_i32_161 = arith.constant 3 : i32
    %475 = vector.broadcast %c3_i32_161 : i32 to vector<8x2xi32>
    %476 = arith.select %473, %475, %469 : vector<8x2xi1>, vector<8x2xi32>
    %477 = vector.extract_strided_slice %451 {offsets = [4, 0], sizes = [1, 2], strides = [1, 1]} : vector<8x2xf32> to vector<1x2xf32>
    %478 = vector.broadcast %477 : vector<1x2xf32> to vector<8x2xf32>
    %479 = arith.addf %478, %12 : vector<8x2xf32>
    %480 = arith.cmpf ogt, %479, %474 : vector<8x2xf32>
    %481 = arith.select %480, %479, %474 : vector<8x2xi1>, vector<8x2xf32>
    %c4_i32_162 = arith.constant 4 : i32
    %482 = vector.broadcast %c4_i32_162 : i32 to vector<8x2xi32>
    %483 = arith.select %480, %482, %476 : vector<8x2xi1>, vector<8x2xi32>
    %484 = vector.extract_strided_slice %451 {offsets = [5, 0], sizes = [1, 2], strides = [1, 1]} : vector<8x2xf32> to vector<1x2xf32>
    %485 = vector.broadcast %484 : vector<1x2xf32> to vector<8x2xf32>
    %486 = arith.addf %485, %14 : vector<8x2xf32>
    %487 = arith.cmpf ogt, %486, %481 : vector<8x2xf32>
    %488 = arith.select %487, %486, %481 : vector<8x2xi1>, vector<8x2xf32>
    %c5_i32_163 = arith.constant 5 : i32
    %489 = vector.broadcast %c5_i32_163 : i32 to vector<8x2xi32>
    %490 = arith.select %487, %489, %483 : vector<8x2xi1>, vector<8x2xi32>
    %491 = vector.extract_strided_slice %451 {offsets = [6, 0], sizes = [1, 2], strides = [1, 1]} : vector<8x2xf32> to vector<1x2xf32>
    %492 = vector.broadcast %491 : vector<1x2xf32> to vector<8x2xf32>
    %493 = arith.addf %492, %16 : vector<8x2xf32>
    %494 = arith.cmpf ogt, %493, %488 : vector<8x2xf32>
    %495 = arith.select %494, %493, %488 : vector<8x2xi1>, vector<8x2xf32>
    %c6_i32_164 = arith.constant 6 : i32
    %496 = vector.broadcast %c6_i32_164 : i32 to vector<8x2xi32>
    %497 = arith.select %494, %496, %490 : vector<8x2xi1>, vector<8x2xi32>
    %498 = arith.trunci %497 : vector<8x2xi32> to vector<8x2xi8>
    %c7 = arith.constant 7 : index
    %c0_165 = arith.constant 0 : index
    %c0_166 = arith.constant 0 : index
    %499 = vector.load %arg5[%c7, %c0_165, %c0_166] : memref<8x8x2xi8, #tpu.memory_space<vmem>>, vector<1x8x2xi8>
    %500 = vector.shape_cast %499 : vector<1x8x2xi8> to vector<8x2xi8>
    %501 = vector.shape_cast %498 : vector<8x2xi8> to vector<1x8x2xi8>
    tpu.vector_store %arg5[%c7, %c0_165, %c0_166], %501 {strides = array<i32>} : memref<8x8x2xi8, #tpu.memory_space<vmem>>, vector<1x8x2xi8>,
    %c7_167 = arith.constant 7 : index
    %c0_168 = arith.constant 0 : index
    %c0_169 = arith.constant 0 : index
    %502 = vector.load %arg3[%c7_167, %c0_168, %c0_169] : memref<8x8x2xf32, #tpu.memory_space<vmem>>, vector<1x8x2xf32>
    %503 = vector.shape_cast %502 : vector<1x8x2xf32> to vector<8x2xf32>
    %504 = arith.addf %495, %503 : vector<8x2xf32>
    %c7_170 = arith.constant 7 : index
    %c0_171 = arith.constant 0 : index
    %c0_172 = arith.constant 0 : index
    %505 = vector.load %arg2[%c7_170, %c0_171, %c0_172] : memref<8x1x2xi32, #tpu.memory_space<vmem>>, vector<1x1x2xi32>
    %506 = vector.shape_cast %505 : vector<1x1x2xi32> to vector<1x2xi32>
    %c0_i32_173 = arith.constant 0 : i32
    %507 = vector.broadcast %c0_i32_173 : i32 to vector<1x2xi32>
    %508 = arith.cmpi sgt, %506, %507 : vector<1x2xi32>
    %509 = vector.shape_cast %508 : vector<1x2xi1> to vector<1x2xi1>
    %510 = vector.broadcast %509 : vector<1x2xi1> to vector<8x2xi1>
    %511 = arith.select %510, %504, %451 : vector<8x2xi1>, vector<8x2xf32>
    %c0_174 = arith.constant 0 : index
    %c0_175 = arith.constant 0 : index
    %512 = vector.load %arg8[%c0_174, %c0_175] : memref<8x2xf32, #tpu.memory_space<vmem>>, vector<8x2xf32>
    tpu.vector_store %arg8[%c0_174, %c0_175], %511 {strides = array<i32>} : memref<8x2xf32, #tpu.memory_space<vmem>>, vector<8x2xf32>,
    %c0_i32_176 = arith.constant 0 : i32
    %513 = arith.cmpi eq, %arg1, %c0_i32_176 : i32
    %514 = arith.extui %513 : i1 to i32
    %c0_i32_177 = arith.constant 0 : i32
    %515 = arith.cmpi ne, %514, %c0_i32_177 : i32
    scf.if %515 {
      %c0_178 = arith.constant 0 : index
      %c0_179 = arith.constant 0 : index
      %516 = vector.load %arg8[%c0_178, %c0_179] : memref<8x2xf32, #tpu.memory_space<vmem>>, vector<8x2xf32>
      %c0_180 = arith.constant 0 : index
      %c0_181 = arith.constant 0 : index
      %c0_182 = arith.constant 0 : index
      %517 = vector.load %arg4[%c0_180, %c0_181, %c0_182] : memref<8x8x2xf32, #tpu.memory_space<vmem>>, vector<8x8x2xf32>
      %518 = vector.extract_strided_slice %517 {offsets = [0, 6, 0], sizes = [8, 1, 2], strides = [1, 1, 1]} : vector<8x8x2xf32> to vector<8x1x2xf32>
      %519 = vector.shape_cast %518 : vector<8x1x2xf32> to vector<8x2xf32>
      %520 = arith.addf %516, %519 : vector<8x2xf32>
      %cst = arith.constant dense<0xFF800000> : vector<2xf32>
      %521 = vector.multi_reduction <maximumf>, %520, %cst [0] : vector<8x2xf32> to vector<2xf32>
      %522 = vector.shape_cast %521 : vector<2xf32> to vector<1x2xf32>
      %523 = tpu.iota {dimensions = array<i32: 0>} : vector<8x2xi32>
      %524 = vector.broadcast %522 : vector<1x2xf32> to vector<8x2xf32>
      %525 = arith.cmpf oge, %520, %524 : vector<8x2xf32>
      %c8_i32 = arith.constant 8 : i32
      %526 = vector.broadcast %c8_i32 : i32 to vector<8x2xi32>
      %527 = arith.select %525, %523, %526 : vector<8x2xi1>, vector<8x2xi32>
      %cst_183 = arith.constant dense<2147483647> : vector<2xi32>
      %528 = vector.multi_reduction <minsi>, %527, %cst_183 [0] : vector<8x2xi32> to vector<2xi32>
      %529 = vector.shape_cast %528 : vector<2xi32> to vector<1x2xi32>
      %c0_184 = arith.constant 0 : index
      %c0_185 = arith.constant 0 : index
      %530 = vector.load %arg6[%c0_184, %c0_185] : memref<1x2xi32, #tpu.memory_space<vmem>>, vector<1x2xi32>
      tpu.vector_store %arg6[%c0_184, %c0_185], %529 {strides = array<i32>} : memref<1x2xi32, #tpu.memory_space<vmem>>, vector<1x2xi32>,
      %531 = vector.broadcast %522 : vector<1x2xf32> to vector<8x2xf32>
      %532 = arith.subf %520, %531 : vector<8x2xf32>
      %533 = math.exp %532 : vector<8x2xf32>
      %cst_186 = arith.constant dense<0.000000e+00> : vector<2xf32>
      %534 = vector.multi_reduction <add>, %533, %cst_186 [0] : vector<8x2xf32> to vector<2xf32>
      %535 = vector.shape_cast %534 : vector<2xf32> to vector<1x2xf32>
      %536 = math.log %535 : vector<1x2xf32>
      %537 = arith.addf %522, %536 : vector<1x2xf32>
      %c0_187 = arith.constant 0 : index
      %c0_188 = arith.constant 0 : index
      %538 = vector.load %arg7[%c0_187, %c0_188] : memref<1x2xf32, #tpu.memory_space<vmem>>, vector<1x2xf32>
      tpu.vector_store %arg7[%c0_187, %c0_188], %537 {strides = array<i32>} : memref<1x2xf32, #tpu.memory_space<vmem>>, vector<1x2xf32>,
    } else {
    }
    return
  }
  func.func @transform_0(%arg0: i32, %arg1: i32) -> (i32, i32, i32) {
    %c0_i32 = arith.constant 0 : i32
    %c0_i32_0 = arith.constant 0 : i32
    return %arg1, %c0_i32, %arg0 : i32, i32, i32
  }
  func.func @transform_1(%arg0: i32, %arg1: i32) -> (i32, i32, i32) {
    %c0_i32 = arith.constant 0 : i32
    %c0_i32_0 = arith.constant 0 : i32
    return %arg1, %c0_i32, %arg0 : i32, i32, i32
  }
  func.func @transform_2(%arg0: i32, %arg1: i32) -> (i32, i32, i32) {
    %c0_i32 = arith.constant 0 : i32
    %c0_i32_0 = arith.constant 0 : i32
    %c0_i32_1 = arith.constant 0 : i32
    %c0_i32_2 = arith.constant 0 : i32
    return %c0_i32, %c0_i32_0, %c0_i32_1 : i32, i32, i32
  }
  func.func @transform_3(%arg0: i32, %arg1: i32) -> (i32, i32, i32) {
    %c0_i32 = arith.constant 0 : i32
    %c0_i32_0 = arith.constant 0 : i32
    return %arg1, %c0_i32, %arg0 : i32, i32, i32
  }
  func.func @transform_4(%arg0: i32, %arg1: i32) -> (i32, i32) {
    %c0_i32 = arith.constant 0 : i32
    %c0_i32_0 = arith.constant 0 : i32
    return %c0_i32, %arg0 : i32, i32
  }
  func.func @transform_5(%arg0: i32, %arg1: i32) -> (i32, i32) {
    %c0_i32 = arith.constant 0 : i32
    %c0_i32_0 = arith.constant 0 : i32
    return %c0_i32, %arg0 : i32, i32
  }
}

</mosaic_0001>

<bundles_post_ra>
// kernel: _viterbi_pallas.1
= control target key start
LH: loop header
LB: loop body
LE: loop exit
PB: predicated region body
PF: predicated region fallthrough
CT: control target
= control target key end

     0   :  { %11 = vsyncpa [#allocation4], 0  ;;  %v23_v0 = vlaneseq  ;;  %vm27_vm0 = vcmask 15360   ;;  %s883_s0 = inlined_call_operand.vmem [shape: s32[8,1,2], index: 0, kind: input, shape index: {}]   ;;  %s884_s1 = inlined_call_operand.vmem [shape: f32[8,8,2], index: 1, kind: input, shape index: {}]   ;;  %s885_s2 = inlined_call_operand.vmem [shape: f32[8,8,2], index: 2, kind: input, shape index: {}]   ;;  %s886_s3 = inlined_call_operand.vmem [shape: s8[8,8,2], index: 3, kind: output, shape index: {0}]   ;;  %s887_s4 = inlined_call_operand.hbm [shape: s32[1,2], index: 4, kind: output, shape index: {1}]   ;;  %s888_s5 = inlined_call_operand.hbm [shape: f32[1,2], index: 5, kind: output, shape index: {2}]  }
   0x2   :  { %v662_v1 = vshrl.u32 %v23_v0, 7 }
   0x3   :  { %12 = vsyncpa [#allocation6], 0  ;;  %v628_v2 = vmov -10000.0   ;;  %v669_v4 = vld [vmem:[%s885_s2] sm:$0xff]  ;;  %v674_v5 = vld [vmem:[%s885_s2 + $0x8] sm:$0xff]  ;;  %v629_v20 = vmov 0  }
   0x4   :  { %vm25_vm1 = vcmp.eq.s32.totalorder %v662_v1, 5  ;;  %v679_v10 = vld [vmem:[%s885_s2 + $0x10] sm:$0xff]  ;;  %v81_v14 = vld [vmem:[%s883_s0] sm:$0x1]  ;;  %v689_v15 = vld [vmem:[%s885_s2 + $0x18] sm:$0xff]  ;;  %vm77_vm10 = vcmask 9216  }
   0x5   :  { %v26_v3 = vsel %vm25_vm1, 0.0, %v628_v2  ;;  %v695_v18 = vld [vmem:[%s885_s2 + $0x20] sm:$0xff]  ;;  %vm82_vm3 = vcmp.gt.s32.totalorder %v81_v14, 0  ;;  %v702_v24 = vld [vmem:[%s885_s2 + $0x28] sm:$0xff]  ;;  %v709_v30 = vld [vmem:[%s885_s2 + $0x30] sm:$0xff]  ;;  %s514_s7 = sshll.u32 %s887_s4, 4  ;;  %s515_s7 = int_to_ptr.hbm [resolvable:$true] %s514_s7 }
   0x6   :  { %28 = vst.msk [vmem:[#allocation2] sm:$0xff] %vm27_vm0, %v26_v3  ;;  %v83_v29 = vsel %vm82_vm3, 1, %v629_v20  ;;  %v79_v39 = vld [vmem:[%s884_s1] sm:$0xff]  ;;  %v548_v14 = vld [vmem:[%s884_s1 + $0x8] sm:$0xff]  ;;  %s631_s4 = smov [#allocation5]   ;;  %s525_s11 = sshll.u32 %s888_s5, 4  ;;  %s526_s11 = int_to_ptr.hbm [resolvable:$true] %s525_s11 }
   0x7   :  { %v84_v35 = vperm.slane %v83_v29, 0  ;;  %v549_v54 = vld [vmem:[%s883_s0 + $0x1] sm:$0x1]  ;;  %s523_s8 = sshll.u32 %s631_s4, 4  ;;  %s524_s8 = int_to_ptr.vmem [resolvable:$true] %s523_s8 }
   0x8   :  { %vm131_vm12 = vcmp.gt.s32.totalorder %v549_v54, 0  ;;  %v551_v54 = vld [vmem:[%s884_s1 + $0x10] sm:$0xff] }
   0x9   :  { %vm85_vm9 = vcmp.eq.s32.totalorder %v84_v35, 1  ;;  %v132_v2 = vsel %vm131_vm12, 1, %v629_v20 }
   0xd   :  { %v42_v6 = vld [vmem:[#allocation2] sm:$0xff] }
   0xe   :  { %v43_v7 = vperm.slane %v42_v6, 0  ;;  %v45_v8 = vperm.slane %v42_v6, 1  ;;  %v50_v9 = vperm.slane %v42_v6, 2  ;;  %v55_v13 = vperm.slane %v42_v6, 3 }
   0xf   :  { %v60_v17 = vperm.slane %v42_v6, 4  ;;  %v65_v23 = vperm.slane %v42_v6, 5  ;;  %v70_v28 = vperm.slane %v42_v6, 6 }
  0x10   :  { %v44_v11 = vadd.f32 %v43_v7, %v669_v4  ;;  %v46_v12 = vadd.f32 %v674_v5, %v45_v8  ;;  %v51_v16 = vadd.f32 %v679_v10, %v50_v9  ;;  %v56_v22 = vadd.f32 %v689_v15, %v55_v13 }
  0x11   :  { %v61_v27 = vadd.f32 %v695_v18, %v60_v17  ;;  %v66_v33 = vadd.f32 %v702_v24, %v65_v23  ;;  %v71_v37 = vadd.f32 %v709_v30, %v70_v28  ;;  %v133_v9 = vperm.slane %v132_v2, 0 }
  0x12   :  { %vm47_vm2 = vcmp.gt.f32.partialorder %v46_v12, %v44_v11 }
  0x13   :  { %v48_v19 = vsel %vm47_vm2, %v46_v12, %v44_v11  ;;  %v49_v21 = vsel %vm47_vm2, 1, %v629_v20  ;;  %vm134_vm3 = vcmp.eq.s32.totalorder %v133_v9, 1 }
  0x14   :  { %vm52_vm4 = vcmp.gt.f32.partialorder %v51_v16, %v48_v19 }
  0x15   :  { %v53_v25 = vsel %vm52_vm4, %v51_v16, %v48_v19  ;;  %v54_v26 = vsel %vm52_vm4, 2, %v49_v21 }
  0x16   :  { %vm57_vm5 = vcmp.gt.f32.partialorder %v56_v22, %v53_v25 }
  0x17   :  { %v58_v31 = vsel %vm57_vm5, %v56_v22, %v53_v25  ;;  %v59_v32 = vsel %vm57_vm5, 3, %v54_v26 }
  0x18   :  { %vm62_vm6 = vcmp.gt.f32.partialorder %v61_v27, %v58_v31 }
  0x19   :  { %v63_v34 = vsel %vm62_vm6, %v61_v27, %v58_v31  ;;  %v64_v36 = vsel %vm62_vm6, 4, %v59_v32 }
  0x1a   :  { %vm67_vm7 = vcmp.gt.f32.partialorder %v66_v33, %v63_v34 }
  0x1b   :  { %v68_v38 = vsel %vm67_vm7, %v66_v33, %v63_v34  ;;  %v69_v40 = vsel %vm67_vm7, 5, %v64_v36  ;;  %v552_v34 = vld [vmem:[%s883_s0 + $0x2] sm:$0x1] }
  0x1c   :  { %vm72_vm8 = vcmp.gt.f32.partialorder %v71_v37, %v68_v38  ;;  %vm179_vm5 = vcmp.gt.s32.totalorder %v552_v34, 0  ;;  %v554_v34 = vld [vmem:[%s884_s1 + $0x18] sm:$0xff] }
  0x1d   :  { %v73_v41 = vsel %vm72_vm8, %v71_v37, %v68_v38  ;;  %v74_v42 = vsel %vm72_vm8, 6, %v69_v40 }
  0x1e   :  { %v80_v43 = vadd.f32 %v79_v39, %v73_v41  ;;  %v75_v44 = vpack.c.b16 %v74_v42, %v74_v42 }
  0x20   :  { %v86_v45 = vsel %vm85_vm9, %v80_v43, %v42_v6  ;;  %v76_v46 = vpack.c.b8 %v75_v44, %v75_v44 }
  0x21   :  { %88 = vst.msk [vmem:[#allocation2] sm:$0xff] %vm27_vm0, %v86_v45  ;;  %v180_v45 = vsel %vm179_vm5, 1, %v629_v20 }
  0x22   :  { %78 = vst.msk [vmem:[%s886_s3] sm:$0x3] %vm77_vm10, %v76_v46 }
  0x28   :  { %v89_v47 = vld [vmem:[#allocation2] sm:$0xff] }
  0x29   :  { %v90_v48 = vperm.slane %v89_v47, 0  ;;  %v92_v49 = vperm.slane %v89_v47, 1  ;;  %v97_v50 = vperm.slane %v89_v47, 2  ;;  %v102_v53 = vperm.slane %v89_v47, 3 }
  0x2a   :  { %v107_v56 = vperm.slane %v89_v47, 4  ;;  %v112_v60 = vperm.slane %v89_v47, 5  ;;  %v117_v0 = vperm.slane %v89_v47, 6 }
  0x2b   :  { %v91_v51 = vadd.f32 %v90_v48, %v669_v4  ;;  %v93_v52 = vadd.f32 %v674_v5, %v92_v49  ;;  %v98_v55 = vadd.f32 %v679_v10, %v97_v50  ;;  %v103_v59 = vadd.f32 %v689_v15, %v102_v53 }
  0x2c   :  { %v108_v63 = vadd.f32 %v695_v18, %v107_v56  ;;  %v113_v7 = vadd.f32 %v702_v24, %v112_v60  ;;  %v118_v12 = vadd.f32 %v709_v30, %v117_v0  ;;  %v181_v50 = vperm.slane %v180_v45, 0 }
  0x2d   :  { %vm94_vm11 = vcmp.gt.f32.partialorder %v93_v52, %v91_v51 }
  0x2e   :  { %v95_v57 = vsel %vm94_vm11, %v93_v52, %v91_v51  ;;  %v96_v58 = vsel %vm94_vm11, 1, %v629_v20  ;;  %vm182_vm12 = vcmp.eq.s32.totalorder %v181_v50, 1 }
  0x2f   :  { %vm99_vm13 = vcmp.gt.f32.partialorder %v98_v55, %v95_v57 }
  0x30   :  { %v100_v61 = vsel %vm99_vm13, %v98_v55, %v95_v57  ;;  %v101_v62 = vsel %vm99_vm13, 2, %v96_v58 }
  0x31   :  { %vm104_vm14 = vcmp.gt.f32.partialorder %v103_v59, %v100_v61 }
  0x32   :  { %v105_v3 = vsel %vm104_vm14, %v103_v59, %v100_v61  ;;  %v106_v6 = vsel %vm104_vm14, 3, %v101_v62 }
  0x33   :  { %vm109_vm15 = vcmp.gt.f32.partialorder %v108_v63, %v105_v3 }
  0x34   :  { %v110_v8 = vsel %vm109_vm15, %v108_v63, %v105_v3  ;;  %v111_v11 = vsel %vm109_vm15, 4, %v106_v6 }
  0x35   :  { %vm114_vm1 = vcmp.gt.f32.partialorder %v113_v7, %v110_v8 }
  0x36   :  { %v115_v13 = vsel %vm114_vm1, %v113_v7, %v110_v8  ;;  %v116_v16 = vsel %vm114_vm1, 5, %v111_v11  ;;  %v555_v8 = vld [vmem:[%s883_s0 + $0x3] sm:$0x1] }
  0x37   :  { %vm119_vm2 = vcmp.gt.f32.partialorder %v118_v12, %v115_v13  ;;  %vm227_vm14 = vcmp.gt.s32.totalorder %v555_v8, 0  ;;  %v557_v8 = vld [vmem:[%s884_s1 + $0x20] sm:$0xff] }
  0x38   :  { %v120_v17 = vsel %vm119_vm2, %v118_v12, %v115_v13  ;;  %v121_v19 = vsel %vm119_vm2, 6, %v116_v16 }
  0x39   :  { %v128_v21 = vadd.f32 %v548_v14, %v120_v17  ;;  %v122_v22 = vpack.c.b16 %v121_v19, %v121_v19 }
  0x3b   :  { %v135_v23 = vsel %vm134_vm3, %v128_v21, %v89_v47  ;;  %v123_v25 = vpack.c.b8 %v122_v22, %v122_v22 }
  0x3c   :  { %136 = vst.msk [vmem:[#allocation2] sm:$0xff] %vm27_vm0, %v135_v23  ;;  %v228_v23 = vsel %vm227_vm14, 1, %v629_v20 }
  0x3d   :  { %547 = vst.msk [vmem:[%s886_s3 + $0x2] sm:$0x3] %vm77_vm10, %v123_v25 }
  0x43   :  { %v137_v26 = vld [vmem:[#allocation2] sm:$0xff] }
  0x44   :  { %v138_v27 = vperm.slane %v137_v26, 0  ;;  %v140_v28 = vperm.slane %v137_v26, 1  ;;  %v145_v29 = vperm.slane %v137_v26, 2  ;;  %v150_v33 = vperm.slane %v137_v26, 3 }
  0x45   :  { %v155_v36 = vperm.slane %v137_v26, 4  ;;  %v160_v40 = vperm.slane %v137_v26, 5  ;;  %v165_v44 = vperm.slane %v137_v26, 6 }
  0x46   :  { %v139_v31 = vadd.f32 %v138_v27, %v669_v4  ;;  %v141_v32 = vadd.f32 %v674_v5, %v140_v28  ;;  %v146_v35 = vadd.f32 %v679_v10, %v145_v29  ;;  %v151_v39 = vadd.f32 %v689_v15, %v150_v33 }
  0x47   :  { %v156_v43 = vadd.f32 %v695_v18, %v155_v36  ;;  %v161_v48 = vadd.f32 %v702_v24, %v160_v40  ;;  %v166_v52 = vadd.f32 %v709_v30, %v165_v44  ;;  %v229_v29 = vperm.slane %v228_v23, 0 }
  0x48   :  { %vm142_vm4 = vcmp.gt.f32.partialorder %v141_v32, %v139_v31 }
  0x49   :  { %v143_v37 = vsel %vm142_vm4, %v141_v32, %v139_v31  ;;  %v144_v38 = vsel %vm142_vm4, 1, %v629_v20  ;;  %vm230_vm5 = vcmp.eq.s32.totalorder %v229_v29, 1 }
  0x4a   :  { %vm147_vm6 = vcmp.gt.f32.partialorder %v146_v35, %v143_v37 }
  0x4b   :  { %v148_v41 = vsel %vm147_vm6, %v146_v35, %v143_v37  ;;  %v149_v42 = vsel %vm147_vm6, 2, %v144_v38 }
  0x4c   :  { %vm152_vm7 = vcmp.gt.f32.partialorder %v151_v39, %v148_v41 }
  0x4d   :  { %v153_v46 = vsel %vm152_vm7, %v151_v39, %v148_v41  ;;  %v154_v47 = vsel %vm152_vm7, 3, %v149_v42 }
  0x4e   :  { %vm157_vm8 = vcmp.gt.f32.partialorder %v156_v43, %v153_v46 }
  0x4f   :  { %v158_v49 = vsel %vm157_vm8, %v156_v43, %v153_v46  ;;  %v159_v51 = vsel %vm157_vm8, 4, %v154_v47 }
  0x50   :  { %vm162_vm9 = vcmp.gt.f32.partialorder %v161_v48, %v158_v49 }
  0x51   :  { %v163_v53 = vsel %vm162_vm9, %v161_v48, %v158_v49  ;;  %v164_v55 = vsel %vm162_vm9, 5, %v159_v51  ;;  %v558_v49 = vld [vmem:[%s883_s0 + $0x4] sm:$0x1] }
  0x52   :  { %vm167_vm11 = vcmp.gt.f32.partialorder %v166_v52, %v163_v53  ;;  %vm275_vm7 = vcmp.gt.s32.totalorder %v558_v49, 0  ;;  %v560_v49 = vld [vmem:[%s884_s1 + $0x28] sm:$0xff] }
  0x53   :  { %v168_v56 = vsel %vm167_vm11, %v166_v52, %v163_v53  ;;  %v169_v57 = vsel %vm167_vm11, 6, %v164_v55 }
  0x54   :  { %v176_v58 = vadd.f32 %v551_v54, %v168_v56  ;;  %v170_v59 = vpack.c.b16 %v169_v57, %v169_v57 }
  0x56   :  { %v183_v60 = vsel %vm182_vm12, %v176_v58, %v137_v26  ;;  %v171_v61 = vpack.c.b8 %v170_v59, %v170_v59 }
  0x57   :  { %184 = vst.msk [vmem:[#allocation2] sm:$0xff] %vm27_vm0, %v183_v60  ;;  %v276_v60 = vsel %vm275_vm7, 1, %v629_v20 }
  0x58   :  { %550 = vst.msk [vmem:[%s886_s3 + $0x4] sm:$0x3] %vm77_vm10, %v171_v61 }
  0x5e   :  { %v185_v62 = vld [vmem:[#allocation2] sm:$0xff] }
  0x5f   :  { %v186_v63 = vperm.slane %v185_v62, 0  ;;  %v188_v0 = vperm.slane %v185_v62, 1  ;;  %v193_v2 = vperm.slane %v185_v62, 2  ;;  %v198_v7 = vperm.slane %v185_v62, 3 }
  0x60   :  { %v203_v11 = vperm.slane %v185_v62, 4  ;;  %v208_v16 = vperm.slane %v185_v62, 5  ;;  %v213_v22 = vperm.slane %v185_v62, 6 }
  0x61   :  { %v187_v3 = vadd.f32 %v186_v63, %v669_v4  ;;  %v189_v6 = vadd.f32 %v674_v5, %v188_v0  ;;  %v194_v9 = vadd.f32 %v679_v10, %v193_v2  ;;  %v199_v14 = vadd.f32 %v689_v15, %v198_v7 }
  0x62   :  { %v204_v21 = vadd.f32 %v695_v18, %v203_v11  ;;  %v209_v27 = vadd.f32 %v702_v24, %v208_v16  ;;  %v214_v32 = vadd.f32 %v709_v30, %v213_v22  ;;  %v277_v2 = vperm.slane %v276_v60, 0 }
  0x63   :  { %vm190_vm13 = vcmp.gt.f32.partialorder %v189_v6, %v187_v3 }
  0x64   :  { %v191_v12 = vsel %vm190_vm13, %v189_v6, %v187_v3  ;;  %v192_v13 = vsel %vm190_vm13, 1, %v629_v20  ;;  %vm278_vm14 = vcmp.eq.s32.totalorder %v277_v2, 1 }
  0x65   :  { %vm195_vm15 = vcmp.gt.f32.partialorder %v194_v9, %v191_v12 }
  0x66   :  { %v196_v17 = vsel %vm195_vm15, %v194_v9, %v191_v12  ;;  %v197_v19 = vsel %vm195_vm15, 2, %v192_v13 }
  0x67   :  { %vm200_vm1 = vcmp.gt.f32.partialorder %v199_v14, %v196_v17 }
  0x68   :  { %v201_v25 = vsel %vm200_vm1, %v199_v14, %v196_v17  ;;  %v202_v26 = vsel %vm200_vm1, 3, %v197_v19 }
  0x69   :  { %vm205_vm2 = vcmp.gt.f32.partialorder %v204_v21, %v201_v25 }
  0x6a   :  { %v206_v28 = vsel %vm205_vm2, %v204_v21, %v201_v25  ;;  %v207_v31 = vsel %vm205_vm2, 4, %v202_v26 }
  0x6b   :  { %vm210_vm3 = vcmp.gt.f32.partialorder %v209_v27, %v206_v28 }
  0x6c   :  { %v211_v33 = vsel %vm210_vm3, %v209_v27, %v206_v28  ;;  %v212_v35 = vsel %vm210_vm3, 5, %v207_v31  ;;  %v561_v28 = vld [vmem:[%s883_s0 + $0x5] sm:$0x1] }
  0x6d   :  { %vm215_vm4 = vcmp.gt.f32.partialorder %v214_v32, %v211_v33  ;;  %vm323_vm1 = vcmp.gt.s32.totalorder %v561_v28, 0  ;;  %v563_v28 = vld [vmem:[%s884_s1 + $0x30] sm:$0xff] }
  0x6e   :  { %v216_v36 = vsel %vm215_vm4, %v214_v32, %v211_v33  ;;  %v217_v37 = vsel %vm215_vm4, 6, %v212_v35 }
  0x6f   :  { %v224_v38 = vadd.f32 %v554_v34, %v216_v36  ;;  %v218_v39 = vpack.c.b16 %v217_v37, %v217_v37 }
  0x71   :  { %v231_v40 = vsel %vm230_vm5, %v224_v38, %v185_v62  ;;  %v219_v41 = vpack.c.b8 %v218_v39, %v218_v39 }
  0x72   :  { %232 = vst.msk [vmem:[#allocation2] sm:$0xff] %vm27_vm0, %v231_v40  ;;  %v324_v40 = vsel %vm323_vm1, 1, %v629_v20 }
  0x73   :  { %553 = vst.msk [vmem:[%s886_s3 + $0x6] sm:$0x3] %vm77_vm10, %v219_v41 }
  0x79   :  { %v233_v42 = vld [vmem:[#allocation2] sm:$0xff] }
  0x7a   :  { %v234_v43 = vperm.slane %v233_v42, 0  ;;  %v236_v44 = vperm.slane %v233_v42, 1  ;;  %v241_v45 = vperm.slane %v233_v42, 2  ;;  %v246_v48 = vperm.slane %v233_v42, 3 }
  0x7b   :  { %v251_v51 = vperm.slane %v233_v42, 4  ;;  %v256_v55 = vperm.slane %v233_v42, 5  ;;  %v261_v59 = vperm.slane %v233_v42, 6 }
  0x7c   :  { %v235_v46 = vadd.f32 %v234_v43, %v669_v4  ;;  %v237_v47 = vadd.f32 %v674_v5, %v236_v44  ;;  %v242_v50 = vadd.f32 %v679_v10, %v241_v45  ;;  %v247_v54 = vadd.f32 %v689_v15, %v246_v48 }
  0x7d   :  { %v252_v58 = vadd.f32 %v695_v18, %v251_v51  ;;  %v257_v63 = vadd.f32 %v702_v24, %v256_v55  ;;  %v262_v6 = vadd.f32 %v709_v30, %v261_v59  ;;  %v325_v45 = vperm.slane %v324_v40, 0 }
  0x7e   :  { %vm238_vm6 = vcmp.gt.f32.partialorder %v237_v47, %v235_v46 }
  0x7f   :  { %v239_v52 = vsel %vm238_vm6, %v237_v47, %v235_v46  ;;  %v240_v53 = vsel %vm238_vm6, 1, %v629_v20  ;;  %vm326_vm7 = vcmp.eq.s32.totalorder %v325_v45, 1 }
  0x80   :  { %vm243_vm8 = vcmp.gt.f32.partialorder %v242_v50, %v239_v52 }
  0x81   :  { %v244_v56 = vsel %vm243_vm8, %v242_v50, %v239_v52  ;;  %v245_v57 = vsel %vm243_vm8, 2, %v240_v53 }
  0x82   :  { %vm248_vm9 = vcmp.gt.f32.partialorder %v247_v54, %v244_v56 }
  0x83   :  { %v249_v61 = vsel %vm248_vm9, %v247_v54, %v244_v56  ;;  %v250_v62 = vsel %vm248_vm9, 3, %v245_v57 }
  0x84   :  { %vm253_vm11 = vcmp.gt.f32.partialorder %v252_v58, %v249_v61 }
  0x85   :  { %v254_v0 = vsel %vm253_vm11, %v252_v58, %v249_v61  ;;  %v255_v3 = vsel %vm253_vm11, 4, %v250_v62 }
  0x86   :  { %vm258_vm12 = vcmp.gt.f32.partialorder %v257_v63, %v254_v0 }
  0x87   :  { %v259_v7 = vsel %vm258_vm12, %v257_v63, %v254_v0  ;;  %v260_v9 = vsel %vm258_vm12, 5, %v255_v3  ;;  %v564_v0 = vld [vmem:[%s883_s0 + $0x6] sm:$0x1] }
  0x88   :  { %vm263_vm13 = vcmp.gt.f32.partialorder %v262_v6, %v259_v7  ;;  %vm371_vm9 = vcmp.gt.s32.totalorder %v564_v0, 0 }
  0x89   :  { %v264_v11 = vsel %vm263_vm13, %v262_v6, %v259_v7  ;;  %v265_v12 = vsel %vm263_vm13, 6, %v260_v9 }
  0x8a   :  { %v272_v13 = vadd.f32 %v557_v8, %v264_v11  ;;  %v266_v14 = vpack.c.b16 %v265_v12, %v265_v12 }
  0x8c   :  { %v279_v16 = vsel %vm278_vm14, %v272_v13, %v233_v42  ;;  %v267_v17 = vpack.c.b8 %v266_v14, %v266_v14 }
  0x8d   :  { %280 = vst.msk [vmem:[#allocation2] sm:$0xff] %vm27_vm0, %v279_v16  ;;  %v372_v16 = vsel %vm371_vm9, 1, %v629_v20 }
  0x8e   :  { %556 = vst.msk [vmem:[%s886_s3 + $0x8] sm:$0x3] %vm77_vm10, %v267_v17 }
  0x94   :  { %v281_v19 = vld [vmem:[#allocation2] sm:$0xff] }
  0x95   :  { %v282_v21 = vperm.slane %v281_v19, 0  ;;  %v284_v22 = vperm.slane %v281_v19, 1  ;;  %v289_v23 = vperm.slane %v281_v19, 2  ;;  %v294_v27 = vperm.slane %v281_v19, 3 }
  0x96   :  { %v299_v31 = vperm.slane %v281_v19, 4  ;;  %v304_v35 = vperm.slane %v281_v19, 5  ;;  %v309_v39 = vperm.slane %v281_v19, 6 }
  0x97   :  { %v283_v25 = vadd.f32 %v282_v21, %v669_v4  ;;  %v285_v26 = vadd.f32 %v674_v5, %v284_v22  ;;  %v290_v29 = vadd.f32 %v679_v10, %v289_v23  ;;  %v295_v34 = vadd.f32 %v689_v15, %v294_v27 }
  0x98   :  { %v300_v38 = vadd.f32 %v695_v18, %v299_v31  ;;  %v305_v43 = vadd.f32 %v702_v24, %v304_v35  ;;  %v310_v47 = vadd.f32 %v709_v30, %v309_v39  ;;  %v373_v23 = vperm.slane %v372_v16, 0 }
  0x99   :  { %vm286_vm15 = vcmp.gt.f32.partialorder %v285_v26, %v283_v25 }
  0x9a   :  { %v287_v32 = vsel %vm286_vm15, %v285_v26, %v283_v25  ;;  %v288_v33 = vsel %vm286_vm15, 1, %v629_v20  ;;  %vm374_vm1 = vcmp.eq.s32.totalorder %v373_v23, 1 }
  0x9b   :  { %vm291_vm2 = vcmp.gt.f32.partialorder %v290_v29, %v287_v32 }
  0x9c   :  { %v292_v36 = vsel %vm291_vm2, %v290_v29, %v287_v32  ;;  %v293_v37 = vsel %vm291_vm2, 2, %v288_v33  ;;  %vm447_vm2 = vcmask 1041409  }
  0x9d   :  { %vm296_vm3 = vcmp.gt.f32.partialorder %v295_v34, %v292_v36 }
  0x9e   :  { %v297_v41 = vsel %vm296_vm3, %v295_v34, %v292_v36  ;;  %v298_v42 = vsel %vm296_vm3, 3, %v293_v37 }
  0x9f   :  { %vm301_vm4 = vcmp.gt.f32.partialorder %v300_v38, %v297_v41 }
  0xa0   :  { %v302_v44 = vsel %vm301_vm4, %v300_v38, %v297_v41  ;;  %v303_v46 = vsel %vm301_vm4, 4, %v298_v42  ;;  %v567_v41 = vld [vmem:[%s883_s0 + $0x7] sm:$0x1]  ;;  %v445_v42 = vrot.slane %v669_v4, 6 }
  0xa1   :  { %vm306_vm5 = vcmp.gt.f32.partialorder %v305_v43, %v302_v44  ;;  %vm419_vm4 = vcmp.gt.s32.totalorder %v567_v41, 0 }
  0xa2   :  { %v307_v48 = vsel %vm306_vm5, %v305_v43, %v302_v44  ;;  %v308_v50 = vsel %vm306_vm5, 5, %v303_v46  ;;  %v446_v43 = vrot.slane %v674_v5, 5 }
  0xa3   :  { %vm311_vm6 = vcmp.gt.f32.partialorder %v310_v47, %v307_v48 }
  0xa4   :  { %v312_v51 = vsel %vm311_vm6, %v310_v47, %v307_v48  ;;  %v313_v52 = vsel %vm311_vm6, 6, %v308_v50  ;;  %vm450_vm6 = vcmask 1042434  }
  0xa5   :  { %v320_v53 = vadd.f32 %v560_v49, %v312_v51  ;;  %v314_v54 = vpack.c.b16 %v313_v52, %v313_v52  ;;  %v448_v51 = vsel %vm447_vm2, %v446_v43, %v445_v42  ;;  %v449_v52 = vrot.slane %v679_v10, 4 }
  0xa6   :  { %vm464_vm2 = vcmask 1047559  }
  0xa7   :  { %v327_v55 = vsel %vm326_vm7, %v320_v53, %v281_v19  ;;  %v315_v56 = vpack.c.b8 %v314_v54, %v314_v54 }
  0xa8   :  { %328 = vst.msk [vmem:[#allocation2] sm:$0xff] %vm27_vm0, %v327_v55 }
  0xa9   :  { %559 = vst.msk [vmem:[%s886_s3 + $0xa] sm:$0x3] %vm77_vm10, %v315_v56 }
  0xaf   :  { %v329_v57 = vld [vmem:[#allocation2] sm:$0xff] }
  0xb0   :  { %v330_v58 = vperm.slane %v329_v57, 0  ;;  %v332_v59 = vperm.slane %v329_v57, 1  ;;  %v337_v60 = vperm.slane %v329_v57, 2  ;;  %v342_v63 = vperm.slane %v329_v57, 3 }
  0xb1   :  { %v347_v3 = vperm.slane %v329_v57, 4  ;;  %v352_v9 = vperm.slane %v329_v57, 5  ;;  %v357_v14 = vperm.slane %v329_v57, 6 }
  0xb2   :  { %v331_v61 = vadd.f32 %v330_v58, %v669_v4  ;;  %v333_v62 = vadd.f32 %v674_v5, %v332_v59  ;;  %v338_v2 = vadd.f32 %v679_v10, %v337_v60  ;;  %v343_v8 = vadd.f32 %v689_v15, %v342_v63 }
  0xb3   :  { %v348_v13 = vadd.f32 %v695_v18, %v347_v3  ;;  %v353_v21 = vadd.f32 %v702_v24, %v352_v9  ;;  %v358_v26 = vadd.f32 %v709_v30, %v357_v14  ;;  %v452_v58 = vrot.slane %v689_v15, 3  ;;  %v436_v14 = vld [vmem:[%s885_s2 + $0x38] sm:$0xff]  ;;  %s630_s2 = smov [#allocation3]  }
  0xb4   :  { %vm334_vm8 = vcmp.gt.f32.partialorder %v333_v62, %v331_v61 }
  0xb5   :  { %v335_v6 = vsel %vm334_vm8, %v333_v62, %v331_v61  ;;  %v336_v7 = vsel %vm334_vm8, 1, %v629_v20  ;;  %v451_v61 = vsel %vm450_vm6, %v449_v52, %v448_v51  ;;  %vm453_vm8 = vcmask 1043459  }
  0xb6   :  { %vm339_vm11 = vcmp.gt.f32.partialorder %v338_v2, %v335_v6  ;;  %v454_v3 = vsel %vm453_vm8, %v452_v58, %v451_v61 }
  0xb7   :  { %v340_v11 = vsel %vm339_vm11, %v338_v2, %v335_v6  ;;  %v341_v12 = vsel %vm339_vm11, 2, %v336_v7  ;;  %v455_v2 = vrot.slane %v695_v18, 2 }
  0xb8   :  { %vm344_vm12 = vcmp.gt.f32.partialorder %v343_v8, %v340_v11 }
  0xb9   :  { %v345_v17 = vsel %vm344_vm12, %v343_v8, %v340_v11  ;;  %v346_v19 = vsel %vm344_vm12, 3, %v341_v12  ;;  %vm456_vm12 = vcmask 1044484   ;;  %v458_v8 = vrot.slane %v702_v24, 1 }
  0xba   :  { %vm349_vm13 = vcmp.gt.f32.partialorder %v348_v13, %v345_v17  ;;  %v457_v12 = vsel %vm456_vm12, %v455_v2, %v454_v3 }
  0xbb   :  { %v350_v22 = vsel %vm349_vm13, %v348_v13, %v345_v17  ;;  %v351_v25 = vsel %vm349_vm13, 4, %v346_v19 }
  0xbc   :  { %vm354_vm14 = vcmp.gt.f32.partialorder %v353_v21, %v350_v22 }
  0xbd   :  { %v355_v27 = vsel %vm354_vm14, %v353_v21, %v350_v22  ;;  %v356_v29 = vsel %vm354_vm14, 5, %v351_v25 }
  0xbe   :  { %vm359_vm15 = vcmp.gt.f32.partialorder %v358_v26, %v355_v27 }
  0xbf   :  { %v360_v31 = vsel %vm359_vm15, %v358_v26, %v355_v27  ;;  %v361_v32 = vsel %vm359_vm15, 6, %v356_v29  ;;  %vm459_vm15 = vcmask 1045509  }
  0xc0   :  { %v368_v33 = vadd.f32 %v563_v28, %v360_v31  ;;  %v362_v34 = vpack.c.b16 %v361_v32, %v361_v32  ;;  %v460_v19 = vsel %vm459_vm15, %v458_v8, %v457_v12 }
  0xc2   :  { %v375_v35 = vsel %vm374_vm1, %v368_v33, %v329_v57  ;;  %v363_v36 = vpack.c.b8 %v362_v34, %v362_v34  ;;  %vm461_vm1 = vcmask 1046534  }
  0xc3   :  { %376 = vst.msk [vmem:[#allocation2] sm:$0xff] %vm27_vm0, %v375_v35  ;;  %v462_v21 = vsel %vm461_vm1, %v709_v30, %v460_v19 }
  0xc4   :  { %562 = vst.msk [vmem:[%s886_s3 + $0xc] sm:$0x3] %vm77_vm10, %v363_v36 }
  0xca   :  { %v377_v37 = vld [vmem:[#allocation2] sm:$0xff] }
  0xcb   :  { %v378_v38 = vperm.slane %v377_v37, 0  ;;  %v380_v39 = vperm.slane %v377_v37, 1  ;;  %v385_v40 = vperm.slane %v377_v37, 2  ;;  %v390_v46 = vperm.slane %v377_v37, 3 }
  0xcc   :  { %v395_v48 = vperm.slane %v377_v37, 4  ;;  %v400_v54 = vperm.slane %v377_v37, 5  ;;  %v405_v57 = vperm.slane %v377_v37, 6 }
  0xcd   :  { %v379_v44 = vadd.f32 %v378_v38, %v669_v4  ;;  %v381_v45 = vadd.f32 %v674_v5, %v380_v39  ;;  %v386_v47 = vadd.f32 %v679_v10, %v385_v40  ;;  %v391_v53 = vadd.f32 %v689_v15, %v390_v46  ;;  %v566_v15 = vld [vmem:[%s884_s1 + $0x38] sm:$0xff] }
  0xce   :  { %v420_v5 = vsel %vm419_vm4, 1, %v629_v20  ;;  %v396_v56 = vadd.f32 %v695_v18, %v395_v48  ;;  %v401_v10 = vadd.f32 %v702_v24, %v400_v54  ;;  %v463_v24 = vrot.slane %v436_v14, 7 }
  0xcf   :  { %vm382_vm3 = vcmp.gt.f32.partialorder %v381_v45, %v379_v44  ;;  %v421_v62 = vperm.slane %v420_v5, 0 }
  0xd0   :  { %v383_v49 = vsel %vm382_vm3, %v381_v45, %v379_v44  ;;  %v384_v50 = vsel %vm382_vm3, 1, %v629_v20  ;;  %v406_v20 = vadd.f32 %v709_v30, %v405_v57  ;;  %v465_v22 = vsel %vm464_vm2, %v463_v24, %v462_v21 }
  0xd1   :  { %vm387_vm5 = vcmp.gt.f32.partialorder %v386_v47, %v383_v49  ;;  %vm422_vm14 = vcmp.eq.s32.totalorder %v421_v62, 1 }
  0xd2   :  { %v388_v4 = vsel %vm387_vm5, %v386_v47, %v383_v49  ;;  %v389_v55 = vsel %vm387_vm5, 2, %v384_v50  ;;  %vm489_vm5 = vcmask 8192  }
  0xd3   :  { %vm392_vm7 = vcmp.gt.f32.partialorder %v391_v53, %v388_v4 }
  0xd4   :  { %v393_v59 = vsel %vm392_vm7, %v391_v53, %v388_v4  ;;  %v394_v60 = vsel %vm392_vm7, 3, %v389_v55 }
  0xd5   :  { %vm397_vm9 = vcmp.gt.f32.partialorder %v396_v56, %v393_v59 }
  0xd6   :  { %v398_v63 = vsel %vm397_vm9, %v396_v56, %v393_v59  ;;  %v399_v0 = vsel %vm397_vm9, 4, %v394_v60 }
  0xd7   :  { %vm402_vm11 = vcmp.gt.f32.partialorder %v401_v10, %v398_v63 }
  0xd8   :  { %v403_v6 = vsel %vm402_vm11, %v401_v10, %v398_v63  ;;  %v404_v7 = vsel %vm402_vm11, 5, %v399_v0 }
  0xd9   :  { %vm407_vm13 = vcmp.gt.f32.partialorder %v406_v20, %v403_v6 }
  0xda   :  { %v408_v9 = vsel %vm407_vm13, %v406_v20, %v403_v6  ;;  %v409_v11 = vsel %vm407_vm13, 6, %v404_v7 }
  0xdb   :  { %v416_v18 = vadd.f32 %v566_v15, %v408_v9  ;;  %v410_v13 = vpack.c.b16 %v409_v11, %v409_v11 }
  0xdd   :  { %v423_v16 = vsel %vm422_vm14, %v416_v18, %v377_v37  ;;  %v411_v17 = vpack.c.b8 %v410_v13, %v410_v13 }
  0xde   :  { %424 = vst.msk [vmem:[#allocation2] sm:$0xff] %vm27_vm0, %v423_v16 }
  0xdf   :  { %565 = vst.msk [vmem:[%s886_s3 + $0xe] sm:$0x3] %vm77_vm10, %v411_v17  ;;  %s512_s3 = sshll.u32 %s630_s2, 4  ;;  %s513_s3 = int_to_ptr.vmem [resolvable:$true] %s512_s3 }
  0xe5   :  { %v428_v23 = vld [vmem:[#allocation2] sm:$0xff] }
  0xe6   :  { %v467_v25 = vadd.f32 %v465_v22, %v428_v23 }
  0xe8   :  { %v468_v26 = vsel %vm27_vm0, %v467_v25, -inf }
  0xe9   :  { %v469_v27 = vrot.slane %v468_v26, 4 }
  0xeb   :  { %v470_v28 = vmax.f32 %v468_v26, %v469_v27 }
  0xed   :  { %v471_v29 = vrot.slane %v470_v28, 2 }
  0xef   :  { %v472_v31 = vmax.f32 %v470_v28, %v471_v29 }
  0xf1   :  { %v473_v32 = vrot.slane %v472_v31, 1 }
  0xf3   :  { %v474_v33 = vmax.f32 %v472_v31, %v473_v32 }
  0xf5   :  { %vm477_vm3 = vcmp.ge.f32.partialorder %v467_v25, %v474_v33  ;;  %v491_v34 = vsub.f32 %v467_v25, %v474_v33 }
  0xf6   :  { %v478_v35 = vsel %vm477_vm3, %v662_v1, 8 }
  0xf7   :  { %v479_v36 = vsel %vm27_vm0, %v478_v35, 2147483647  ;;  %v492_v37 = vmul.f32 1.442695, %v491_v34 }
  0xf8   :  { %v480_v30 = vrot.slane %v479_v36, 4 }
  0xf9   :  { %572 = vpow2.f32 %v492_v37 }
  0xfa   :  { %vm481_vm10 = vcmp.lt.s32.totalorder %v479_v36, %v480_v30 }
  0xfb   :  { %v482_v38 = vsel %vm481_vm10, %v479_v36, %v480_v30 }
  0xfc   :  { %v483_v39 = vrot.slane %v482_v38, 2 }
  0xfe   :  { %vm484_vm4 = vcmp.lt.s32.totalorder %v482_v38, %v483_v39 }
  0xff   :  { %v573_v40 = vpop.eup %572  ;;  %v485_v41 = vsel %vm484_vm4, %v482_v38, %v483_v39 }
 0x100   :  { %v486_v42 = vrot.slane %v485_v41, 1  ;;  %v494_v1 = vsel %vm27_vm0, %v573_v40, 0.0 }
 0x101   :  { %v495_v43 = vrot.slane %v494_v1, 4 }
 0x102   :  { %vm487_vm6 = vcmp.lt.s32.totalorder %v485_v41, %v486_v42 }
 0x103   :  { %v488_v44 = vsel %vm487_vm6, %v485_v41, %v486_v42  ;;  %v496_v45 = vadd.f32 %v495_v43, %v494_v1 }
 0x104   :  { %490 = vst.msk [vmem:[#allocation3] sm:$0x1] %vm489_vm5, %v488_v44 }
 0x105   :  { %v497_v46 = vrot.slane %v496_v45, 2  ;;  %517 = dma.vmem_to_hbm [thread:$0]  %s513_s3, 16, %s515_s7, [#allocation4]  }
 0x107   :  { %v498_v47 = vadd.f32 %v497_v46, %v496_v45 }
 0x109   :  { %v499_v48 = vrot.slane %v498_v47, 1 }
 0x10b   :  { %v500_v49 = vadd.f32 %v499_v48, %v498_v47 }
 0x10d   :  { %574 = vlog2.f32 %v500_v49 }
 0x113   :  { %v575_v50 = vpop.eup %574 }
 0x114   :  { %v502_v51 = vmul.f32 0.6931472, %v575_v50 }
 0x116   :  { %v503_v52 = vadd.f32 %v502_v51, %v474_v33 }
 0x118   :  { %504 = vst.msk [vmem:[#allocation5] sm:$0x1] %vm489_vm5, %v503_v52 }
 0x119   :  { %528 = dma.vmem_to_hbm [thread:$0]  %s524_s8, 16, %s526_s11, [#allocation6]  }
 0x11a   :  { %624 = dma.done.wait [#allocation4], 16  }
 0x11b   :  { %625 = vsyncadd [#allocation4], 4294967280 }
 0x11c   :  { %626 = dma.done.wait [#allocation6], 16  }
 0x11d   :  { %627 = vsyncadd [#allocation6], 4294967280 }
 0x11e   :  { %539 = vsyncpa [#allocation4], 1 }
 0x11f   :  { %540 = vsyncpa [#allocation6], 1 }

</bundles_post_ra>
